<compile_context>
chip_gen: v5e
topology: v5e:2x2
jax: 0.10.0
libtpu: 0.0.40
codegen_flags: <defaults>
</compile_context>

<pallas_src>
import jax
import jax.numpy as jnp
from jax.experimental import pallas as pl
from jax.experimental.pallas import tpu as pltpu


def _round_up(x, m):
    return (x + m - 1) // m * m


# ----------------------------- fused Pallas kernel ---------------------------

def _make_kernel(mode, *, H, W, stride, TR):
    """Fused expand -> depthwise -> project (+ residual) kernel.

    mode: "none"      stride != 1 (no residual)
          "identity"  stride == 1 and in_planes == out_planes
          "conv"      stride == 1 and in_planes != out_planes (fused 1x1 shortcut)
    """
    S = stride
    Wo = (W - 1) // S + 1                  # output cols for k=3, pad=1
    TR_in = (TR - 1) * S + 3               # padded input rows feeding TR out rows
    NROWS = TR_in * S                      # flattened (row, phase) extent

    def body(x_ref, m_ref, w1_ref, s1_ref, wdw_ref, s2_ref, w3_ref, s3_ref,
             ws_ref, ss_ref, o_ref, acc_ref):
        cin = x_ref.shape[3]
        planes = w1_ref.shape[1]

        r = pl.program_id(1)
        # first flattened (padded_row * S + phase) index of this strip
        f0 = pl.multiple_of(r * (TR * S * S), TR * S * S)

        # ---- expand: 1x1 conv (bf16 MXU, f32 acc) + folded bias/BN + ReLU ----
        xs = x_ref[0, pl.ds(f0, NROWS), :, :]               # (NROWS, Wc, cin)
        Wc = xs.shape[1]
        y = jnp.dot(xs.reshape(NROWS * Wc, cin), w1_ref[...],
                    preferred_element_type=jnp.float32)
        y = jnp.maximum(y + s1_ref[...], 0.0)
        y = y.reshape(NROWS, Wc, planes)
        # zero the conv zero-padding ring (expand(0) = relu(shift) != 0)
        y = y * m_ref[pl.ds(f0, NROWS), :, :]

        # ---- depthwise 3x3 (+ folded bias/BN) + ReLU, f32 on the VPU ---------
        if S == 1:
            acc = jnp.zeros((TR, Wo, planes), jnp.float32)
            for kh in range(3):
                for kw in range(3):
                    k = 3 * kh + kw
                    acc = acc + (y[kh:kh + TR, kw:kw + Wo, :]
                                 * wdw_ref[k:k + 1, :])
        else:
            # columns were pre-split into S phases by the wrapper and rows are
            # statically unrolled, so every tap is a contiguous slice.
            for i in range(TR):
                row = jnp.zeros((Wo, planes), jnp.float32)
                for kh in range(3):
                    for kw in range(3):
                        k = 3 * kh + kw
                        row = row + (y[(S * i + kh) * S + kw % S,
                                       kw // S:kw // S + Wo, :]
                                     * wdw_ref[k:k + 1, :])
                acc_ref[i] = row
            acc = acc_ref[...]
        acc = jnp.maximum(acc + s2_ref[...], 0.0)            # (TR, Wo, planes)

        # ---- project: 1x1 conv (bf16 MXU) + folded bias/BN (+ fused residual)
        z = acc.reshape(TR * Wo, planes).astype(jnp.bfloat16)
        out = jnp.dot(z, w3_ref[...], preferred_element_type=jnp.float32)
        out = out + s3_ref[...]
        if mode != "none":                                   # stride == 1 only
            # residual reuses the already VMEM-resident input tile
            xr = x_ref[0, pl.ds(r * TR + 1, TR), pl.ds(1, W), :]   # (TR, W, cin)
            xr2 = xr.reshape(TR * W, cin)
            if mode == "conv":
                out = out + (jnp.dot(xr2, ws_ref[...],
                                     preferred_element_type=jnp.float32)
                             + ss_ref[...])
            else:                                            # identity shortcut
                out = out + xr2.astype(jnp.float32)

        # lane-dense store: (cout, TR*Wo) puts the flattened spatial axis on the
        # 128-lane axis and lands directly in NCHW order.
        o_ref[0] = out.T.astype(o_ref.dtype)

    if mode == "conv":
        def kernel(x, m, w1, s1, wdw, s2, w3, s3, ws, ss, o):
            body(x, m, w1, s1, wdw, s2, w3, s3, ws, ss, o, None)
    elif mode == "identity":
        def kernel(x, m, w1, s1, wdw, s2, w3, s3, o):
            body(x, m, w1, s1, wdw, s2, w3, s3, None, None, o, None)
    else:  # "none": stride != 1, no residual; uses the acc scratch
        def kernel(x, m, w1, s1, wdw, s2, w3, s3, o, acc):
            body(x, m, w1, s1, wdw, s2, w3, s3, None, None, o, acc)
    return kernel


def _choose_row_tile(N, Ho, Wo, stride, Wc, planes):
    # divisors of Ho whose flattened output strip (TR*Wo) is a multiple of the
    # 128-lane width (a block equal to the full array dim is also legal)
    cands = [t for t in range(1, Ho + 1)
             if Ho % t == 0 and ((t * Wo) % 128 == 0 or t == Ho)]
    # keep the in-flight expanded strip small vs VMEM and bound the row unroll
    budget = 8 << 20
    ok = [t for t in cands
          if ((t - 1) * stride + 3) * stride * Wc * planes * 4 <= budget
          and t <= 32]
    cands = ok or [min(cands)]
    # prefer >= 4 grid steps so both megacore TCs get work and DMAs can overlap
    spread = [t for t in cands if N * (Ho // t) >= 4]
    return max(spread) if spread else max(cands)


# ------------------------------- Block forward --------------------------------

def block_forward(x_nchw, fp, *, stride):
    N, cin, H, W = x_nchw.shape
    planes = fp["w1"].shape[1]
    cout = fp["w3"].shape[1]
    S = stride
    Ho = (H - 1) // S + 1
    Wo = (W - 1) // S + 1
    Hp = H + 2
    # column-phase ("space-to-depth on W") layout: padded column c lives at
    # [phase = c % S, half = c // S]; Wc rounded to the bf16 sublane tile so the
    # in-kernel reshapes stay layout-friendly.
    Wc = _round_up((W + 1) // S + 1, 16)

    mode = "none" if S != 1 else ("conv" if "ws" in fp else "identity")
    if mode == "identity":
        assert cin == cout

    x = jnp.transpose(x_nchw, (0, 2, 3, 1)).astype(jnp.bfloat16)      # NHWC bf16
    xp = jnp.pad(x, ((0, 0), (1, 1), (1, S * Wc - (W + 1)), (0, 0)))  # (N,Hp,S*Wc,cin)
    xp = xp.reshape(N, Hp, Wc, S, cin).transpose(0, 1, 3, 2, 4)       # (N,Hp,S,Wc,cin)
    xp = xp.reshape(N, Hp * S, Wc, cin)                               # flatten (row,phase)

    # 0/1 mask of the real (non-padding) pixels, same flattened layout
    rows = jnp.arange(Hp)
    row_ok = (rows >= 1) & (rows <= H)
    col = jnp.arange(S)[:, None] + jnp.arange(Wc)[None, :] * S        # (S, Wc)
    col_ok = (col >= 1) & (col <= W)
    mask = (row_ok[:, None, None] & col_ok[None, :, :]).astype(jnp.float32)
    mask = mask.reshape(Hp * S, Wc)[:, :, None]                       # (Hp*S, Wc, 1)

    TR = _choose_row_tile(N, Ho, Wo, S, Wc, planes)
    RT = Ho // TR

    kernel = _make_kernel(mode, H=H, W=W, stride=S, TR=TR)

    args = [xp, mask, fp["w1"], fp["s1"], fp["wdw"], fp["s2"], fp["w3"], fp["s3"]]
    in_specs = [
        # whole padded image + mask stay VMEM-resident across the row-strip axis
        pl.BlockSpec((1, Hp * S, Wc, cin), lambda n, r: (n, 0, 0, 0)),
        pl.BlockSpec((Hp * S, Wc, 1), lambda n, r: (0, 0, 0)),
        pl.BlockSpec((cin, planes), lambda n, r: (0, 0)),
        pl.BlockSpec((1, planes), lambda n, r: (0, 0)),
        pl.BlockSpec((9, planes), lambda n, r: (0, 0)),
        pl.BlockSpec((1, planes), lambda n, r: (0, 0)),
        pl.BlockSpec((planes, cout), lambda n, r: (0, 0)),
        pl.BlockSpec((1, cout), lambda n, r: (0, 0)),
    ]
    if mode == "conv":
        args += [fp["ws"], fp["ss"]]
        in_specs += [pl.BlockSpec((cin, cout), lambda n, r: (0, 0)),
                     pl.BlockSpec((1, cout), lambda n, r: (0, 0))]
    scratch = [] if S == 1 else [pltpu.VMEM((TR, Wo, planes), jnp.float32)]

    out = pl.pallas_call(
        kernel,
        out_shape=jax.ShapeDtypeStruct((N, cout, Ho * Wo), jnp.float32),
        grid=(N, RT),
        in_specs=in_specs,
        out_specs=pl.BlockSpec((1, cout, TR * Wo), lambda n, r: (n, 0, r)),
        scratch_shapes=scratch,
        compiler_params=pltpu.CompilerParams(
            dimension_semantics=("parallel", "parallel")),
    )(*args)
    return out.reshape(N, cout, Ho, Wo)                               # NCHW


# ------------------------------ pure-JAX reference ----------------------------

def ref_forward(x_nchw, fp, *, stride):
    x = jnp.transpose(x_nchw, (0, 2, 3, 1)).astype(jnp.bfloat16)
    H, W = x.shape[1], x.shape[2]
    wdw = fp["wdw"].reshape(3, 3, -1)
    y = jnp.einsum("nhwc,cd->nhwd", x, fp["w1"],
                   preferred_element_type=jnp.float32) + fp["s1"][0]
    y = jnp.maximum(y, 0.0)
    yp = jnp.pad(y, ((0, 0), (1, 1), (1, 1), (0, 0)))
    N, _, _, C = yp.shape
    Ho = (H - 1) // stride + 1
    Wo = (W - 1) // stride + 1
    acc = jnp.zeros((N, Ho, Wo, C), jnp.float32)
    for kh in range(3):
        for kw in range(3):
            acc = acc + yp[:, kh:kh + (Ho - 1) * stride + 1:stride,
                           kw:kw + (Wo - 1) * stride + 1:stride, :] * wdw[kh, kw]
    acc = jnp.maximum(acc + fp["s2"][0], 0.0)
    out = jnp.einsum("nhwc,cd->nhwd", acc.astype(jnp.bfloat16), fp["w3"],
                     preferred_element_type=jnp.float32) + fp["s3"][0]
    if stride == 1:
        if "ws" in fp:
            res = jnp.einsum("nhwc,cd->nhwd", x, fp["ws"],
                             preferred_element_type=jnp.float32) + fp["ss"][0]
        else:
            res = x.astype(jnp.float32)
        out = out + res
    return jnp.transpose(out, (0, 3, 1, 2))


# ----------------------------------- params -----------------------------------

def fold_bn(gamma, beta, mean, var, eps=1e-5):
    scale = gamma / jnp.sqrt(var + eps)
    shift = beta - mean * scale
    return scale, shift


def init_params(key, in_planes, out_planes, expansion, stride):
    planes = expansion * in_planes
    ks = jax.random.split(key, 16)
    p = {}
    p["w1"] = 0.1 * jax.random.normal(ks[0], (in_planes, planes), jnp.float32)
    p["b1"] = 0.05 * jax.random.normal(ks[1], (planes,), jnp.float32)
    p["sc1"], p["sh1"] = fold_bn(
        1.0 + 0.1 * jax.random.normal(ks[2], (planes,)),
        0.05 * jax.random.normal(ks[3], (planes,)),
        0.1 * jax.random.normal(ks[4], (planes,)),
        0.5 + jax.random.uniform(ks[5], (planes,)))
    p["wdw"] = 0.1 * jax.random.normal(ks[6], (3, 3, planes), jnp.float32)
    p["b2"] = 0.05 * jax.random.normal(ks[7], (planes,), jnp.float32)
    p["sc2"], p["sh2"] = fold_bn(
        1.0 + 0.1 * jax.random.normal(ks[8], (planes,)),
        0.05 * jax.random.normal(ks[9], (planes,)),
        0.1 * jax.random.normal(ks[10], (planes,)),
        0.5 + jax.random.uniform(ks[11], (planes,)))
    p["w3"] = 0.1 * jax.random.normal(ks[12], (planes, out_planes), jnp.float32)
    p["b3"] = 0.05 * jax.random.normal(ks[13], (out_planes,), jnp.float32)
    p["sc3"], p["sh3"] = fold_bn(
        1.0 + 0.1 * jax.random.normal(ks[14], (out_planes,)),
        0.05 * jax.random.normal(ks[15], (out_planes,)),
        jnp.zeros((out_planes,)), jnp.ones((out_planes,)))
    if stride == 1 and in_planes != out_planes:
        ks2 = jax.random.split(ks[0], 4)
        p["ws"] = 0.1 * jax.random.normal(ks2[0], (in_planes, out_planes), jnp.float32)
        p["bs"] = 0.05 * jax.random.normal(ks2[1], (out_planes,), jnp.float32)
        p["scs"], p["shs"] = fold_bn(
            1.0 + 0.1 * jax.random.normal(ks2[2], (out_planes,)),
            0.05 * jax.random.normal(ks2[3], (out_planes,)),
            jnp.zeros((out_planes,)), jnp.ones((out_planes,)))
    return p


def fold_params(p, *, stride, in_planes, out_planes):
    """Fold conv bias + BN (inference) into the weights; bf16 on the MXU path."""
    fp = {
        "w1": (p["w1"] * p["sc1"][None, :]).astype(jnp.bfloat16),
        "s1": (p["b1"] * p["sc1"] + p["sh1"]).reshape(1, -1).astype(jnp.float32),
        "wdw": (p["wdw"] * p["sc2"][None, None, :]).reshape(9, -1).astype(jnp.float32),
        "s2": (p["b2"] * p["sc2"] + p["sh2"]).reshape(1, -1).astype(jnp.float32),
        "w3": (p["w3"] * p["sc3"][None, :]).astype(jnp.bfloat16),
        "s3": (p["b3"] * p["sc3"] + p["sh3"]).reshape(1, -1).astype(jnp.float32),
    }
    if stride == 1 and in_planes != out_planes:
        fp["ws"] = (p["ws"] * p["scs"][None, :]).astype(jnp.bfloat16)
        fp["ss"] = (p["bs"] * p["scs"] + p["shs"]).reshape(1, -1).astype(jnp.float32)
    return fp


# ------------------------------------ main -------------------------------------

if __name__ == "__main__":
    key = jax.random.PRNGKey(0)
    N, H, W = 2, 16, 16
    configs = [
        # (in_planes, out_planes, expansion, stride)
        (8, 16, 4, 1),     # stride 1, fused 1x1-conv shortcut (cin != cout)
        (16, 16, 4, 1),    # stride 1, identity shortcut
        (8, 16, 4, 2),     # stride 2, no residual
    ]
    for in_planes, out_planes, expansion, stride in configs:
        key, kx, kp = jax.random.split(key, 3)
        x = jax.random.normal(kx, (N, in_planes, H, W), jnp.float32)   # NCHW
        raw = init_params(kp, in_planes, out_planes, expansion, stride)
        fp = fold_params(raw, stride=stride,
                         in_planes=in_planes, out_planes=out_planes)

        out = jax.block_until_ready(block_forward(x, fp, stride=stride))
        ref = jax.block_until_ready(ref_forward(x, fp, stride=stride))

        Ho = (H - 1) // stride + 1
        assert out.shape == (N, out_planes, Ho, Ho), out.shape
        assert jnp.allclose(out, ref, atol=2e-2, rtol=2e-2), \
            f"mismatch for config {(in_planes, out_planes, expansion, stride)}"

    print("KERNEL_OK")
</pallas_src>

<mosaic_0001>
module attributes {stable_mosaic.version = 11 : i64} {
  func.func @kernel(%arg0: i32, %arg1: i32, %arg2: memref<1x18x32x8xbf16, #tpu.memory_space<vmem>>, %arg3: memref<18x32x1xf32, #tpu.memory_space<vmem>>, %arg4: memref<8x32xbf16, #tpu.memory_space<vmem>>, %arg5: memref<1x32xf32, #tpu.memory_space<vmem>>, %arg6: memref<9x32xf32, #tpu.memory_space<vmem>>, %arg7: memref<1x32xf32, #tpu.memory_space<vmem>>, %arg8: memref<32x16xbf16, #tpu.memory_space<vmem>>, %arg9: memref<1x16xf32, #tpu.memory_space<vmem>>, %arg10: memref<8x16xbf16, #tpu.memory_space<vmem>>, %arg11: memref<1x16xf32, #tpu.memory_space<vmem>>, %arg12: memref<1x16x128xf32, #tpu.memory_space<vmem>>) attributes {dimension_semantics = [#tpu.dimension_semantics<parallel>, #tpu.dimension_semantics<parallel>], iteration_bounds = array<i64: 2, 2>, scalar_prefetch = 0 : i64, scratch_operands = 0 : i64, tpu.core_type = #tpu.core_type<tc>, window_params = [{transform_indices = @transform_0, window_bounds = array<i64: 1, 18, 32, 8>}, {pipeline_mode = #tpu.pipeline_mode<synchronous>, transform_indices = @transform_1, window_bounds = array<i64: 18, 32, 1>}, {pipeline_mode = #tpu.pipeline_mode<synchronous>, transform_indices = @transform_2, window_bounds = array<i64: 8, 32>}, {pipeline_mode = #tpu.pipeline_mode<synchronous>, transform_indices = @transform_3, window_bounds = array<i64: 1, 32>}, {pipeline_mode = #tpu.pipeline_mode<synchronous>, transform_indices = @transform_4, window_bounds = array<i64: 9, 32>}, {pipeline_mode = #tpu.pipeline_mode<synchronous>, transform_indices = @transform_5, window_bounds = array<i64: 1, 32>}, {pipeline_mode = #tpu.pipeline_mode<synchronous>, transform_indices = @transform_6, window_bounds = array<i64: 32, 16>}, {pipeline_mode = #tpu.pipeline_mode<synchronous>, transform_indices = @transform_7, window_bounds = array<i64: 1, 16>}, {pipeline_mode = #tpu.pipeline_mode<synchronous>, transform_indices = @transform_8, window_bounds = array<i64: 8, 16>}, {pipeline_mode = #tpu.pipeline_mode<synchronous>, transform_indices = @transform_9, window_bounds = array<i64: 1, 16>}, {transform_indices = @transform_10, window_bounds = array<i64: 1, 16, 128>}]} {
    %c8_i32 = arith.constant 8 : i32
    %0 = arith.muli %arg1, %c8_i32 : i32
    %1 = tpu.assume_multiple %0, 8 : i32
    %c0 = arith.constant 0 : index
    %2 = arith.index_cast %1 : i32 to index
    %c0_0 = arith.constant 0 : index
    %c0_1 = arith.constant 0 : index
    %3 = vector.load %arg2[%c0, %2, %c0_0, %c0_1] : memref<1x18x32x8xbf16, #tpu.memory_space<vmem>>, vector<1x10x32x8xbf16>
    %4 = vector.shape_cast %3 : vector<1x10x32x8xbf16> to vector<10x32x8xbf16>
    %5 = vector.shape_cast %4 : vector<10x32x8xbf16> to vector<320x8xbf16>
    %c0_2 = arith.constant 0 : index
    %c0_3 = arith.constant 0 : index
    %6 = vector.load %arg4[%c0_2, %c0_3] : memref<8x32xbf16, #tpu.memory_space<vmem>>, vector<8x32xbf16>
    %cst = arith.constant dense<0.000000e+00> : vector<320x32xf32>
    %7 = tpu.matmul %5, %6, %cst {dimension_numbers = #tpu.dot_dimension_numbers<[1], [0], [0], [1], [0, 0, 1, 1], [], []>} : vector<320x8xbf16>, vector<8x32xbf16>, vector<320x32xf32> -> vector<320x32xf32>
    %c0_4 = arith.constant 0 : index
    %c0_5 = arith.constant 0 : index
    %8 = vector.load %arg5[%c0_4, %c0_5] : memref<1x32xf32, #tpu.memory_space<vmem>>, vector<1x32xf32>
    %9 = vector.broadcast %8 : vector<1x32xf32> to vector<320x32xf32>
    %10 = arith.addf %7, %9 : vector<320x32xf32>
    %cst_6 = arith.constant 0.000000e+00 : f32
    %11 = vector.broadcast %cst_6 : f32 to vector<320x32xf32>
    %12 = arith.maximumf %10, %11 : vector<320x32xf32>
    %13 = vector.shape_cast %12 : vector<320x32xf32> to vector<10x32x32xf32>
    %14 = arith.index_cast %1 : i32 to index
    %c0_7 = arith.constant 0 : index
    %c0_8 = arith.constant 0 : index
    %15 = vector.load %arg3[%14, %c0_7, %c0_8] : memref<18x32x1xf32, #tpu.memory_space<vmem>>, vector<10x32x1xf32>
    %16 = vector.broadcast %15 : vector<10x32x1xf32> to vector<10x32x32xf32>
    %17 = arith.mulf %13, %16 : vector<10x32x32xf32>
    %cst_9 = arith.constant 0.000000e+00 : f32
    %18 = vector.broadcast %cst_9 : f32 to vector<8x16x32xf32>
    %19 = vector.extract_strided_slice %17 {offsets = [0, 0, 0], sizes = [8, 16, 32], strides = [1, 1, 1]} : vector<10x32x32xf32> to vector<8x16x32xf32>
    %c0_10 = arith.constant 0 : index
    %c0_11 = arith.constant 0 : index
    %20 = vector.load %arg6[%c0_10, %c0_11] : memref<9x32xf32, #tpu.memory_space<vmem>>, vector<1x32xf32>
    %21 = vector.shape_cast %20 : vector<1x32xf32> to vector<1x1x32xf32>
    %22 = vector.broadcast %21 : vector<1x1x32xf32> to vector<8x16x32xf32>
    %23 = arith.mulf %19, %22 : vector<8x16x32xf32>
    %24 = arith.addf %18, %23 : vector<8x16x32xf32>
    %25 = vector.extract_strided_slice %17 {offsets = [0, 1, 0], sizes = [8, 16, 32], strides = [1, 1, 1]} : vector<10x32x32xf32> to vector<8x16x32xf32>
    %c1 = arith.constant 1 : index
    %c0_12 = arith.constant 0 : index
    %26 = vector.load %arg6[%c1, %c0_12] : memref<9x32xf32, #tpu.memory_space<vmem>>, vector<1x32xf32>
    %27 = vector.shape_cast %26 : vector<1x32xf32> to vector<1x1x32xf32>
    %28 = vector.broadcast %27 : vector<1x1x32xf32> to vector<8x16x32xf32>
    %29 = arith.mulf %25, %28 : vector<8x16x32xf32>
    %30 = arith.addf %24, %29 : vector<8x16x32xf32>
    %31 = vector.extract_strided_slice %17 {offsets = [0, 2, 0], sizes = [8, 16, 32], strides = [1, 1, 1]} : vector<10x32x32xf32> to vector<8x16x32xf32>
    %c2 = arith.constant 2 : index
    %c0_13 = arith.constant 0 : index
    %32 = vector.load %arg6[%c2, %c0_13] : memref<9x32xf32, #tpu.memory_space<vmem>>, vector<1x32xf32>
    %33 = vector.shape_cast %32 : vector<1x32xf32> to vector<1x1x32xf32>
    %34 = vector.broadcast %33 : vector<1x1x32xf32> to vector<8x16x32xf32>
    %35 = arith.mulf %31, %34 : vector<8x16x32xf32>
    %36 = arith.addf %30, %35 : vector<8x16x32xf32>
    %37 = vector.extract_strided_slice %17 {offsets = [1, 0, 0], sizes = [8, 16, 32], strides = [1, 1, 1]} : vector<10x32x32xf32> to vector<8x16x32xf32>
    %c3 = arith.constant 3 : index
    %c0_14 = arith.constant 0 : index
    %38 = vector.load %arg6[%c3, %c0_14] : memref<9x32xf32, #tpu.memory_space<vmem>>, vector<1x32xf32>
    %39 = vector.shape_cast %38 : vector<1x32xf32> to vector<1x1x32xf32>
    %40 = vector.broadcast %39 : vector<1x1x32xf32> to vector<8x16x32xf32>
    %41 = arith.mulf %37, %40 : vector<8x16x32xf32>
    %42 = arith.addf %36, %41 : vector<8x16x32xf32>
    %43 = vector.extract_strided_slice %17 {offsets = [1, 1, 0], sizes = [8, 16, 32], strides = [1, 1, 1]} : vector<10x32x32xf32> to vector<8x16x32xf32>
    %c4 = arith.constant 4 : index
    %c0_15 = arith.constant 0 : index
    %44 = vector.load %arg6[%c4, %c0_15] : memref<9x32xf32, #tpu.memory_space<vmem>>, vector<1x32xf32>
    %45 = vector.shape_cast %44 : vector<1x32xf32> to vector<1x1x32xf32>
    %46 = vector.broadcast %45 : vector<1x1x32xf32> to vector<8x16x32xf32>
    %47 = arith.mulf %43, %46 : vector<8x16x32xf32>
    %48 = arith.addf %42, %47 : vector<8x16x32xf32>
    %49 = vector.extract_strided_slice %17 {offsets = [1, 2, 0], sizes = [8, 16, 32], strides = [1, 1, 1]} : vector<10x32x32xf32> to vector<8x16x32xf32>
    %c5 = arith.constant 5 : index
    %c0_16 = arith.constant 0 : index
    %50 = vector.load %arg6[%c5, %c0_16] : memref<9x32xf32, #tpu.memory_space<vmem>>, vector<1x32xf32>
    %51 = vector.shape_cast %50 : vector<1x32xf32> to vector<1x1x32xf32>
    %52 = vector.broadcast %51 : vector<1x1x32xf32> to vector<8x16x32xf32>
    %53 = arith.mulf %49, %52 : vector<8x16x32xf32>
    %54 = arith.addf %48, %53 : vector<8x16x32xf32>
    %55 = vector.extract_strided_slice %17 {offsets = [2, 0, 0], sizes = [8, 16, 32], strides = [1, 1, 1]} : vector<10x32x32xf32> to vector<8x16x32xf32>
    %c6 = arith.constant 6 : index
    %c0_17 = arith.constant 0 : index
    %56 = vector.load %arg6[%c6, %c0_17] : memref<9x32xf32, #tpu.memory_space<vmem>>, vector<1x32xf32>
    %57 = vector.shape_cast %56 : vector<1x32xf32> to vector<1x1x32xf32>
    %58 = vector.broadcast %57 : vector<1x1x32xf32> to vector<8x16x32xf32>
    %59 = arith.mulf %55, %58 : vector<8x16x32xf32>
    %60 = arith.addf %54, %59 : vector<8x16x32xf32>
    %61 = vector.extract_strided_slice %17 {offsets = [2, 1, 0], sizes = [8, 16, 32], strides = [1, 1, 1]} : vector<10x32x32xf32> to vector<8x16x32xf32>
    %c7 = arith.constant 7 : index
    %c0_18 = arith.constant 0 : index
    %62 = vector.load %arg6[%c7, %c0_18] : memref<9x32xf32, #tpu.memory_space<vmem>>, vector<1x32xf32>
    %63 = vector.shape_cast %62 : vector<1x32xf32> to vector<1x1x32xf32>
    %64 = vector.broadcast %63 : vector<1x1x32xf32> to vector<8x16x32xf32>
    %65 = arith.mulf %61, %64 : vector<8x16x32xf32>
    %66 = arith.addf %60, %65 : vector<8x16x32xf32>
    %67 = vector.extract_strided_slice %17 {offsets = [2, 2, 0], sizes = [8, 16, 32], strides = [1, 1, 1]} : vector<10x32x32xf32> to vector<8x16x32xf32>
    %c8 = arith.constant 8 : index
    %c0_19 = arith.constant 0 : index
    %68 = vector.load %arg6[%c8, %c0_19] : memref<9x32xf32, #tpu.memory_space<vmem>>, vector<1x32xf32>
    %69 = vector.shape_cast %68 : vector<1x32xf32> to vector<1x1x32xf32>
    %70 = vector.broadcast %69 : vector<1x1x32xf32> to vector<8x16x32xf32>
    %71 = arith.mulf %67, %70 : vector<8x16x32xf32>
    %72 = arith.addf %66, %71 : vector<8x16x32xf32>
    %c0_20 = arith.constant 0 : index
    %c0_21 = arith.constant 0 : index
    %73 = vector.load %arg7[%c0_20, %c0_21] : memref<1x32xf32, #tpu.memory_space<vmem>>, vector<1x32xf32>
    %74 = vector.shape_cast %73 : vector<1x32xf32> to vector<1x1x32xf32>
    %75 = vector.broadcast %74 : vector<1x1x32xf32> to vector<8x16x32xf32>
    %76 = arith.addf %72, %75 : vector<8x16x32xf32>
    %cst_22 = arith.constant 0.000000e+00 : f32
    %77 = vector.broadcast %cst_22 : f32 to vector<8x16x32xf32>
    %78 = arith.maximumf %76, %77 : vector<8x16x32xf32>
    %79 = vector.shape_cast %78 : vector<8x16x32xf32> to vector<128x32xf32>
    %80 = arith.truncf %79 : vector<128x32xf32> to vector<128x32xbf16>
    %c0_23 = arith.constant 0 : index
    %c0_24 = arith.constant 0 : index
    %81 = vector.load %arg8[%c0_23, %c0_24] : memref<32x16xbf16, #tpu.memory_space<vmem>>, vector<32x16xbf16>
    %cst_25 = arith.constant dense<0.000000e+00> : vector<128x16xf32>
    %82 = tpu.matmul %80, %81, %cst_25 {dimension_numbers = #tpu.dot_dimension_numbers<[1], [0], [0], [1], [0, 0, 1, 1], [], []>} : vector<128x32xbf16>, vector<32x16xbf16>, vector<128x16xf32> -> vector<128x16xf32>
    %c0_26 = arith.constant 0 : index
    %c0_27 = arith.constant 0 : index
    %83 = vector.load %arg9[%c0_26, %c0_27] : memref<1x16xf32, #tpu.memory_space<vmem>>, vector<1x16xf32>
    %84 = vector.broadcast %83 : vector<1x16xf32> to vector<128x16xf32>
    %85 = arith.addf %82, %84 : vector<128x16xf32>
    %c8_i32_28 = arith.constant 8 : i32
    %86 = arith.muli %arg1, %c8_i32_28 : i32
    %c1_i32 = arith.constant 1 : i32
    %87 = arith.addi %86, %c1_i32 : i32
    %c0_29 = arith.constant 0 : index
    %88 = arith.index_cast %87 : i32 to index
    %c1_30 = arith.constant 1 : index
    %c0_31 = arith.constant 0 : index
    %89 = vector.load %arg2[%c0_29, %88, %c1_30, %c0_31] : memref<1x18x32x8xbf16, #tpu.memory_space<vmem>>, vector<1x8x16x8xbf16>
    %90 = vector.shape_cast %89 : vector<1x8x16x8xbf16> to vector<8x16x8xbf16>
    %91 = vector.shape_cast %90 : vector<8x16x8xbf16> to vector<128x8xbf16>
    %c0_32 = arith.constant 0 : index
    %c0_33 = arith.constant 0 : index
    %92 = vector.load %arg10[%c0_32, %c0_33] : memref<8x16xbf16, #tpu.memory_space<vmem>>, vector<8x16xbf16>
    %cst_34 = arith.constant dense<0.000000e+00> : vector<128x16xf32>
    %93 = tpu.matmul %91, %92, %cst_34 {dimension_numbers = #tpu.dot_dimension_numbers<[1], [0], [0], [1], [0, 0, 1, 1], [], []>} : vector<128x8xbf16>, vector<8x16xbf16>, vector<128x16xf32> -> vector<128x16xf32>
    %c0_35 = arith.constant 0 : index
    %c0_36 = arith.constant 0 : index
    %94 = vector.load %arg11[%c0_35, %c0_36] : memref<1x16xf32, #tpu.memory_space<vmem>>, vector<1x16xf32>
    %95 = vector.broadcast %94 : vector<1x16xf32> to vector<128x16xf32>
    %96 = arith.addf %93, %95 : vector<128x16xf32>
    %97 = arith.addf %85, %96 : vector<128x16xf32>
    %98 = tpu.transpose %97, [1, 0] : vector<128x16xf32> -> vector<16x128xf32>
    %c0_37 = arith.constant 0 : index
    %c0_38 = arith.constant 0 : index
    %c0_39 = arith.constant 0 : index
    %99 = vector.load %arg12[%c0_37, %c0_38, %c0_39] : memref<1x16x128xf32, #tpu.memory_space<vmem>>, vector<1x16x128xf32>
    %100 = vector.shape_cast %99 : vector<1x16x128xf32> to vector<16x128xf32>
    %101 = vector.shape_cast %98 : vector<16x128xf32> to vector<1x16x128xf32>
    tpu.vector_store %arg12[%c0_37, %c0_38, %c0_39], %101 {strides = array<i32>} : memref<1x16x128xf32, #tpu.memory_space<vmem>>, vector<1x16x128xf32>,
    return
  }
  func.func @transform_0(%arg0: i32, %arg1: i32) -> (i32, i32, i32, i32) {
    %c0_i32 = arith.constant 0 : i32
    %c0_i32_0 = arith.constant 0 : i32
    %c0_i32_1 = arith.constant 0 : i32
    %c0_i32_2 = arith.constant 0 : i32
    return %arg0, %c0_i32, %c0_i32_0, %c0_i32_1 : i32, i32, i32, i32
  }
  func.func @transform_1(%arg0: i32, %arg1: i32) -> (i32, i32, i32) {
    %c0_i32 = arith.constant 0 : i32
    %c0_i32_0 = arith.constant 0 : i32
    %c0_i32_1 = arith.constant 0 : i32
    %c0_i32_2 = arith.constant 0 : i32
    return %c0_i32, %c0_i32_0, %c0_i32_1 : i32, i32, i32
  }
  func.func @transform_2(%arg0: i32, %arg1: i32) -> (i32, i32) {
    %c0_i32 = arith.constant 0 : i32
    %c0_i32_0 = arith.constant 0 : i32
    %c0_i32_1 = arith.constant 0 : i32
    return %c0_i32, %c0_i32_0 : i32, i32
  }
  func.func @transform_3(%arg0: i32, %arg1: i32) -> (i32, i32) {
    %c0_i32 = arith.constant 0 : i32
    %c0_i32_0 = arith.constant 0 : i32
    %c0_i32_1 = arith.constant 0 : i32
    return %c0_i32, %c0_i32_0 : i32, i32
  }
  func.func @transform_4(%arg0: i32, %arg1: i32) -> (i32, i32) {
    %c0_i32 = arith.constant 0 : i32
    %c0_i32_0 = arith.constant 0 : i32
    %c0_i32_1 = arith.constant 0 : i32
    return %c0_i32, %c0_i32_0 : i32, i32
  }
  func.func @transform_5(%arg0: i32, %arg1: i32) -> (i32, i32) {
    %c0_i32 = arith.constant 0 : i32
    %c0_i32_0 = arith.constant 0 : i32
    %c0_i32_1 = arith.constant 0 : i32
    return %c0_i32, %c0_i32_0 : i32, i32
  }
  func.func @transform_6(%arg0: i32, %arg1: i32) -> (i32, i32) {
    %c0_i32 = arith.constant 0 : i32
    %c0_i32_0 = arith.constant 0 : i32
    %c0_i32_1 = arith.constant 0 : i32
    return %c0_i32, %c0_i32_0 : i32, i32
  }
  func.func @transform_7(%arg0: i32, %arg1: i32) -> (i32, i32) {
    %c0_i32 = arith.constant 0 : i32
    %c0_i32_0 = arith.constant 0 : i32
    %c0_i32_1 = arith.constant 0 : i32
    return %c0_i32, %c0_i32_0 : i32, i32
  }
  func.func @transform_8(%arg0: i32, %arg1: i32) -> (i32, i32) {
    %c0_i32 = arith.constant 0 : i32
    %c0_i32_0 = arith.constant 0 : i32
    %c0_i32_1 = arith.constant 0 : i32
    return %c0_i32, %c0_i32_0 : i32, i32
  }
  func.func @transform_9(%arg0: i32, %arg1: i32) -> (i32, i32) {
    %c0_i32 = arith.constant 0 : i32
    %c0_i32_0 = arith.constant 0 : i32
    %c0_i32_1 = arith.constant 0 : i32
    return %c0_i32, %c0_i32_0 : i32, i32
  }
  func.func @transform_10(%arg0: i32, %arg1: i32) -> (i32, i32, i32) {
    %c0_i32 = arith.constant 0 : i32
    %c0_i32_0 = arith.constant 0 : i32
    return %arg0, %c0_i32, %arg1 : i32, i32, i32
  }
}

</mosaic_0001>

<bundles_post_ra>
// kernel: tpu_custom_call.1
= control target key start
LH: loop header
LB: loop body
LE: loop exit
PB: predicated region body
PF: predicated region fallthrough
CT: control target
= control target key end

     0   :  { %s4068_s0 = inlined_call_operand.vmem [shape: bf16[2,18,32,8], index: 0, kind: input, shape index: {}]   ;;  %s4069_s1 = inlined_call_operand.vmem [shape: f32[18,32,1], index: 1, kind: input, shape index: {}]   ;;  %s4070_s2 = inlined_call_operand.vmem [shape: bf16[8,32], index: 2, kind: input, shape index: {}]   ;;  %s4071_s3 = inlined_call_operand.vmem [shape: f32[1,32], index: 3, kind: input, shape index: {}]   ;;  %s4072_s4 = inlined_call_operand.vmem [shape: f32[9,32], index: 4, kind: input, shape index: {}]   ;;  %s4073_s5 = inlined_call_operand.vmem [shape: f32[1,32], index: 5, kind: input, shape index: {}]   ;;  %s4074_s6 = inlined_call_operand.vmem [shape: bf16[32,16], index: 6, kind: input, shape index: {}]   ;;  %s4075_s7 = inlined_call_operand.vmem [shape: f32[1,16], index: 7, kind: input, shape index: {}]   ;;  %s4076_s8 = inlined_call_operand.vmem [shape: bf16[8,16], index: 8, kind: input, shape index: {}]   ;;  %s4077_s9 = inlined_call_operand.vmem [shape: f32[1,16], index: 9, kind: input, shape index: {}]   ;;  %s4078_s10 = inlined_call_operand.hbm [shape: f32[2,16,256], index: 10, kind: output, shape index: {}]  }
   0x1   :  { %4104 = sst [smem:[#allocation24_spill]] %s4068_s0 }
   0x2   :  { %4105 = sst [smem:[#allocation25_spill]] %s4069_s1 }
   0x3   :  { %4106 = sst [smem:[#allocation26_spill]] %s4070_s2 }
   0x4   :  { %4107 = sst [smem:[#allocation27_spill]] %s4071_s3 }
   0x5   :  { %15 = vsyncpa [#allocation3], 0 }
   0x6   :  { %17 = vsyncpa [#allocation3 + $0x1], 0  ;;  %s2831_s13 = smov 0   ;;  %s2833_s14 = smov 0  }
   0x7   :  { %s2835_s15 = smov 0   ;;  %s2837_s16 = smov 0  }
   0x8   :  { %s2839_s17 = smov 0   ;;  %s2841_s18 = smov 0  }
   0x9   :  { %s2843_s19 = smov 0   ;;  %s2845_s20 = smov 0  }
   0xa LB: > { %s2380_s21 = sadd.s32 4294967295, %s2770_s20   ;;  %s2381_s22 = sadd.s32 4294967294, %s2770_s20   ;;  %s2770_s20 = sphi %s2845_s20, %s23_s20   ;;  %s2766_s19 = sphi %s2843_s19, %s4178_s19   ;;  %s2762_s18 = sphi %s2841_s18, %s4177_s18   ;;  %s2758_s17 = sphi %s2839_s17, %s4176_s17   ;;  %s2754_s16 = sphi %s2837_s16, %s4175_s16   ;;  %s2750_s15 = sphi %s2835_s15, %s4174_s15   ;;  %s2746_s14 = sphi %s2833_s14, %s4173_s14   ;;  %s2742_s13 = sphi %s2831_s13, %s4172_s13  }
   0xb   : > { %s32_s23 = sadd.s32 1, %s2762_s18  ;;  %s35_s24 = sadd.s32 1, %s2766_s19 }
   0xc   : > { %p33_p0 = scmp.ge.s32.totalorder %s32_s23, 2  ;;  %p269_p1 = scmp.ne.s32.totalorder %s2750_s15, %s2746_s14 }
   0xd   : > { %p270_p2 = scmp.eq.s32.totalorder %s2380_s21, 3  ;;  %p275_p5 = scmp.ne.s32.totalorder %s2746_s14, %s2742_s13 }
   0xe   : > { %s4180_s23 = smov (%p33_p0, %s32_s23), 0  ;;  %s4182_s24 = smov (!%p33_p0, %s35_s24), %s2766_s19 }
   0xf   : > { %4108 = sst [smem:[#allocation5_spill]] %s4180_s23  ;;  %s255_s25 = ssub.s32 %s2762_s18, %s4180_s23 }
  0x10   : > { %p2882_p3 = por %p270_p2, %p269_p1  ;;  %p37_p4 = scmp.ge.s32.totalorder %s4182_s24, 2 }
  0x11   : > { %p276_p6 = scmp.eq.s32.totalorder %s2381_s22, 3  ;;  %p2384_p7 = scmp.ge.s32.totalorder %s2770_s20, 1 }
  0x12   : > { %s4184_s24 = smov (%p37_p4, %s4182_s24), 0  ;;  %p329_p9 = scmp.lt.s32.totalorder %s2770_s20, 5 }
  0x13   : > { %4110 = sst [smem:[#allocation6_spill]] %s4184_s24  ;;  %p2891_p8 = por %p276_p6, %p275_p5 }
  0x14   : > { %s254_s28 = ssub.s32 %s2766_s19, %s4184_s24  ;;  %s259_s29 = sadd.s32 1, %s2750_s15 }
  0x15   : > { %s256_s30 = sor.u32 %s255_s25, %s254_s28  ;;  %p330_p10 = pnand %p2384_p7, %p329_p9 }
  0x16   : > { %p257_p11 = scmp.eq.s32.totalorder %s256_s30, 0 }
  0x17   : > { %333 = sbr.rel (%p330_p10) target bundleno = 631 (0x277), region = 60 }
  0x18   : > { %s2900_s11 = scalar_select %p257_p11, %s2750_s15, %s259_s29  }
  0x1c   : > { %s4112_s2 = sld [smem:[#allocation26_spill]]  ;;  %vm583_vm0 = vcmask 1043456   ;;  %p367_p12 = scmp.lt.s32.totalorder %s2758_s17, 1  ;;  %v2772_v2 = vmov 0   ;;  %vm522_vm1 = vcmask 64512   ;;  %vm1012_vm2 = vcmask 1046528  }
  0x1d   : > { %s2568_s22 = sshll.u32 %s2754_s16, 8  ;;  %2649 = vset.pattern.permute.xlu0 %v2772_v2  ;;  %s4113_s1 = sld [smem:[#allocation25_spill]]  ;;  %2650 = vset.pattern.permute.xlu1 %v2772_v2  ;;  %vm1135_vm3 = vcmask 1045504   ;;  %vm1930_vm4 = vsmask.f32 3328  ;;  %vm1828_vm7 = vcmask 261120  }
  0x1e   : > { %s368_s25 = scalar_select %p367_p12, %s2758_s17, 1  ;;  %2651 = vset.pattern.permute.xlu2 %v2772_v2  ;;  %vm1931_vm5 = vsmask.f32 7440 }
  0x1f   : > { %s2547_s21 = sshll.u32 %s2754_s16, 7  ;;  %s4114_s0 = sld [smem:[#allocation24_spill]]  ;;  %vm3133_vm6 = vmor %vm1930_vm4, %vm1931_vm5 }
  0x20   : > { %s2573_s12 = smul.u32 288, %s368_s25  ;;  %s4115_s3 = sld [smem:[#allocation27_spill]] }
  0x22   : > { %v417_v0 = vld [vmem:[%s4112_s2] sm:$0xf]  ;;  %s2542_s2 = sshll.u32 %s2758_s17, 2 }
  0x23   : > { %v585_v1 = vsel %vm583_vm0, %v417_v0, 0  ;;  %s2912_s30 = scalar_lea.vmem %s4113_s1, %s2568_s22  ;;  %s2291_s24 = sadd.s32 %s2754_s16, %s2542_s2 }
  0x24   : > { %594 = vmatpush.bf16.msra.mxu0 %v585_v1  ;;  %2572 = vmatpush.bf16.msra.mxu3 %v585_v1  ;;  %v718_v3 = vld [vmem:[%s2912_s30] sm:$0xff]  ;;  %v720_v4 = vld [vmem:[%s2912_s30 + $0x10] sm:$0xff]  ;;  %v719_v7 = vld [vmem:[%s2912_s30 + $0x8] sm:$0xff]  ;;  %s2543_s25 = sshll.u32 %s2291_s24, 3 }
  0x25   : > { %750 = vperm.xlu0 %2649, %v718_v3   ;;  %760 = vperm.xlu1 %2650, %v720_v4   ;;  %s371_s23 = scalar_lea.vmem %s4114_s0, %s2573_s12  ;;  %v721_v8 = vld [vmem:[%s2912_s30 + $0x20] sm:$0xff]  ;;  %v725_v12 = vld [vmem:[%s2912_s30 + $0x48] sm:$0xff]  ;;  %v723_v19 = vld [vmem:[%s2912_s30 + $0x30] sm:$0xff]  ;;  %s2293_s12 = scalar_lea.hbm %s4078_s10, %s2543_s25 }
  0x26   : > { %s2920_s22 = scalar_lea.vmem %s371_s23, %s2547_s21  ;;  %v724_v11 = vld [vmem:[%s2912_s30 + $0x40] sm:$0xff]  ;;  %v722_v13 = vld [vmem:[%s2912_s30 + $0x28] sm:$0xff]  ;;  %v726_v22 = vld [vmem:[%s2912_s30 + $0x50] sm:$0xff]  ;;  %s2296_s0 = sshll.u32 %s2293_s12, 4  ;;  %s2297_s0 = int_to_ptr.hbm [resolvable:$true] %s2296_s0 }
  0x27   : > { %v2548_v5 = vld [vmem:[%s2920_s22] sm:$0xff]  ;;  %v2558_v6 = vld [vmem:[%s2920_s22 + $0x50] sm:$0xff]  ;;  %v2549_v9 = vld [vmem:[%s2920_s22 + $0x8] sm:$0xff]  ;;  %770 = vperm.xlu2 %2651, %v722_v13  }
  0x28   : > { %2470 = vmatmul.msk.bf16.vlgmr.msra.gmra.mxu0 %vm522_vm1, %v2548_v5  ;;  %2480 = vmatmul.msk.bf16.vlgmr.msra.gmra.mxu3 %vm522_vm1, %v2558_v6  ;;  %v2559_v10 = vld [vmem:[%s2920_s22 + $0x58] sm:$0xff]  ;;  %v727_v14 = vld [vmem:[%s2912_s30 + $0x60] sm:$0xff]  ;;  %v728_v15 = vld [vmem:[%s2912_s30 + $0x68] sm:$0xff] }
  0x29   : > { %v2550_v16 = vld [vmem:[%s2920_s22 + $0x10] sm:$0xff]  ;;  %v2560_v17 = vld [vmem:[%s2920_s22 + $0x60] sm:$0xff]  ;;  %v731_v20 = vld [vmem:[%s2912_s30 + $0x88] sm:$0xff] }
  0x2a   : > { %v730_v18 = vld [vmem:[%s2912_s30 + $0x80] sm:$0xff]  ;;  %v734_v23 = vld [vmem:[%s2912_s30 + $0xa8] sm:$0xff]  ;;  %v2551_v24 = vld [vmem:[%s2920_s22 + $0x18] sm:$0xff] }
  0x2b   : > { %v733_v21 = vld [vmem:[%s2912_s30 + $0xa0] sm:$0xff]  ;;  %v2561_v25 = vld [vmem:[%s2920_s22 + $0x68] sm:$0xff]  ;;  %v729_v27 = vld [vmem:[%s2912_s30 + $0x70] sm:$0xff] }
  0x2c   : > { %v736_v26 = vld [vmem:[%s2912_s30 + $0xc0] sm:$0xff]  ;;  %v737_v28 = vld [vmem:[%s2912_s30 + $0xc8] sm:$0xff]  ;;  %v732_v30 = vld [vmem:[%s2912_s30 + $0x90] sm:$0xff] }
  0x2d   : > { %755 = vperm.xlu0 %2649, %v719_v7   ;;  %765 = vperm.xlu1 %2650, %v721_v8   ;;  %v739_v29 = vld [vmem:[%s2912_s30 + $0xe0] sm:$0xff]  ;;  %v740_v31 = vld [vmem:[%s2912_s30 + $0xe8] sm:$0xff]  ;;  %v2562_v33 = vld [vmem:[%s2920_s22 + $0x70] sm:$0xff] }
  0x2e   : > { %v2552_v32 = vld [vmem:[%s2920_s22 + $0x20] sm:$0xff]  ;;  %v735_v35 = vld [vmem:[%s2912_s30 + $0xb0] sm:$0xff]  ;;  %v743_v36 = vld [vmem:[%s2912_s30 + $0x108] sm:$0xff] }
  0x2f   : > { %775 = vperm.xlu2 %2651, %v723_v19   ;;  %v742_v34 = vld [vmem:[%s2912_s30 + $0x100] sm:$0xff]  ;;  %v738_v38 = vld [vmem:[%s2912_s30 + $0xd0] sm:$0xff]  ;;  %v746_v39 = vld [vmem:[%s2912_s30 + $0x128] sm:$0xff] }
  0x30   : > { %v745_v37 = vld [vmem:[%s2912_s30 + $0x120] sm:$0xff]  ;;  %v2553_v40 = vld [vmem:[%s2920_s22 + $0x28] sm:$0xff]  ;;  %v2563_v41 = vld [vmem:[%s2920_s22 + $0x78] sm:$0xff] }
  0x31   : > { %v741_v42 = vld [vmem:[%s2912_s30 + $0xf0] sm:$0xff]  ;;  %v2564_v44 = vld [vmem:[%s2920_s22 + $0x80] sm:$0xff]  ;;  %v2555_v47 = vld [vmem:[%s2920_s22 + $0x38] sm:$0xff] }
  0x32   : > { %v2554_v43 = vld [vmem:[%s2920_s22 + $0x30] sm:$0xff]  ;;  %v2565_v48 = vld [vmem:[%s2920_s22 + $0x88] sm:$0xff]  ;;  %v2556_v51 = vld [vmem:[%s2920_s22 + $0x40] sm:$0xff] }
  0x33   : > { %v744_v45 = vld [vmem:[%s2912_s30 + $0x110] sm:$0xff]  ;;  %v2557_v63 = vld [vmem:[%s2920_s22 + $0x48] sm:$0xff]  ;;  %v2567_v0 = vld [vmem:[%s2920_s22 + $0x98] sm:$0xff] }
  0x34   : > { %v747_v46 = vld [vmem:[%s2912_s30 + $0x130] sm:$0xff]  ;;  %v3001_v3 = vld [vmem:[%s4115_s3] ss:$0 sm:$0xff] }
  0x35   : > { %780 = vperm.xlu0 %2649, %v724_v11   ;;  %785 = vperm.xlu1 %2650, %v725_v12   ;;  %v2566_v52 = vld [vmem:[%s2920_s22 + $0x90] sm:$0xff] }
  0x37   : > { %790 = vperm.xlu2 %2651, %v726_v22  }
  0x38   : > { %2471 = vmatmul.msk.bf16.gmra.mxu0 %vm522_vm1, %v2549_v9  ;;  %2481 = vmatmul.msk.bf16.gmra.mxu3 %vm522_vm1, %v2559_v10 }
  0x3d   : > { %795 = vperm.xlu0 %2649, %v727_v14   ;;  %800 = vperm.xlu1 %2650, %v728_v15  }
  0x3f   : > { %805 = vperm.xlu2 %2651, %v729_v27  }
  0x45   : > { %810 = vperm.xlu0 %2649, %v730_v18   ;;  %815 = vperm.xlu1 %2650, %v731_v20   ;;  %v3017_v18 = vld [vmem:[%s4072_s4 + $0x1] ss:$0 sm:$0xff] }
  0x47   : > { %820 = vperm.xlu2 %2651, %v732_v30  }
  0x48   : > { %2472 = vmatmul.msk.bf16.gmra.mxu0 %vm522_vm1, %v2550_v16  ;;  %2482 = vmatmul.msk.bf16.gmra.mxu3 %vm522_vm1, %v2560_v17 }
  0x4d   : > { %825 = vperm.xlu0 %2649, %v733_v21   ;;  %830 = vperm.xlu1 %2650, %v734_v23  }
  0x4f   : > { %835 = vperm.xlu2 %2651, %v735_v35  }
  0x55   : > { %840 = vperm.xlu0 %2649, %v736_v26   ;;  %845 = vperm.xlu1 %2650, %v737_v28   ;;  %v3031_v28 = vld [vmem:[%s4072_s4 + $0x2] ss:$0 sm:$0xff] }
  0x57   : > { %850 = vperm.xlu2 %2651, %v738_v38  }
  0x58   : > { %2473 = vmatmul.msk.bf16.gmra.mxu0 %vm522_vm1, %v2551_v24  ;;  %2483 = vmatmul.msk.bf16.gmra.mxu3 %vm522_vm1, %v2561_v25 }
  0x5d   : > { %855 = vperm.xlu0 %2649, %v739_v29   ;;  %860 = vperm.xlu1 %2650, %v740_v31  }
  0x5f   : > { %865 = vperm.xlu2 %2651, %v741_v42  }
  0x65   : > { %870 = vperm.xlu0 %2649, %v742_v34   ;;  %875 = vperm.xlu1 %2650, %v743_v36  }
  0x67   : > { %880 = vperm.xlu2 %2651, %v744_v45  }
  0x68   : > { %2474 = vmatmul.msk.bf16.gmra.mxu0 %vm522_vm1, %v2552_v32  ;;  %2484 = vmatmul.msk.bf16.gmra.mxu3 %vm522_vm1, %v2562_v33  ;;  %v3038_v33 = vld [vmem:[%s4072_s4] ss:$0 sm:$0xff] }
  0x6d   : > { %885 = vperm.xlu0 %2649, %v745_v37   ;;  %890 = vperm.xlu1 %2650, %v746_v39  }
  0x6f   : > { %895 = vperm.xlu2 %2651, %v747_v46  }
  0x78   : > { %2475 = vmatmul.msk.bf16.gmra.mxu0 %vm522_vm1, %v2553_v40  ;;  %2485 = vmatmul.msk.bf16.gmra.mxu3 %vm522_vm1, %v2563_v41 }
  0x81   : > { %v2982_v50 = vpop.permute.xlu2 %770 }
  0x88   : > { %2476 = vmatmul.msk.bf16.gmra.mxu0 %vm522_vm1, %v2554_v43  ;;  %2486 = vmatmul.msk.bf16.gmra.mxu3 %vm522_vm1, %v2564_v44 }
  0x89   : > { %v2988_v55 = vpop.permute.xlu2 %775 }
  0x91   : > { %v2990_v60 = vpop.permute.xlu2 %790 }
  0x97   : > { %v751_v49 = vpop.permute.xlu0 %750  ;;  %v761_v53 = vpop.permute.xlu1 %760 }
  0x98   : > { %2477 = vmatmul.msk.bf16.gmra.mxu0 %vm522_vm1, %v2555_v47  ;;  %2487 = vmatmul.msk.bf16.gmra.mxu3 %vm522_vm1, %v2565_v48  ;;  %v3052_v48 = vld [vmem:[%s4072_s4 + $0x4] ss:$0 sm:$0xff] }
  0x99   : > { %v3007_v7 = vpop.permute.xlu2 %805 }
  0x9f   : > { %v756_v57 = vpop.permute.xlu0 %755  ;;  %v766_v58 = vpop.permute.xlu1 %765 }
  0xa1   : > { %v3019_v21 = vpop.permute.xlu2 %820 }
  0xa5   : > { %v596_v54 = vpop.f32.mrf.mxu0 }
  0xa6   : > { %v597_v8 = vadd.f32 %v3001_v3, %v596_v54 }
  0xa7   : > { %v2992_v62 = vpop.permute.xlu0 %780  ;;  %v2996_v2 = vpop.permute.xlu1 %785 }
  0xa8   : > { %2478 = vmatmul.msk.bf16.gmra.mxu0 %vm522_vm1, %v2556_v51  ;;  %2488 = vmatmul.msk.bf16.gmra.mxu3 %vm522_vm1, %v2566_v52  ;;  %v686_v13 = vmax.f32 %v597_v8, 0.0 }
  0xa9   : > { %v836_v51 = vpop.permute.xlu2 %835 }
  0xaa   : > { %v898_v19 = vmul.f32 %v751_v49, %v686_v13  ;;  %v3057_v49 = vld [vmem:[%s4072_s4 + $0x5] ss:$0 sm:$0xff]  ;;  %v3080_v13 = vld [vmem:[%s4072_s4 + $0x3] ss:$0 sm:$0xff] }
  0xab   : > { %v641_v56 = vpop.f32.mrf.mxu3 }
  0xac   : > { %v964_v26 = vmul.f32 %v3017_v18, %v898_v19  ;;  %v642_v39 = vadd.f32 %v3001_v3, %v641_v56  ;;  %v1087_v42 = vmul.f32 %v3031_v28, %v898_v19  ;;  %v930_v46 = vmul.f32 %v3038_v33, %v898_v19 }
  0xad   : > { %v598_v59 = vpop.f32.mrf.mxu0 }
  0xae   : > { %v599_v4 = vadd.f32 %v3001_v3, %v598_v59  ;;  %v1013_v35 = vrot.slane %v964_v26, 1 }
  0xaf   : > { %v3010_v10 = vpop.permute.xlu0 %795  ;;  %v3012_v14 = vpop.permute.xlu1 %800 }
  0xb0   : > { %v687_v11 = vmax.f32 %v599_v4, 0.0 }
  0xb2   : > { %v899_v15 = vmul.f32 %v756_v57, %v687_v11  ;;  %v701_v57 = vmax.f32 %v642_v39, 0.0 }
  0xb3   : > { %v643_v61 = vpop.f32.mrf.mxu3 }
  0xb4   : > { %v965_v22 = vmul.f32 %v3017_v18, %v899_v15  ;;  %v1088_v36 = vmul.f32 %v3031_v28, %v899_v15  ;;  %v644_v40 = vadd.f32 %v3001_v3, %v643_v61  ;;  %v931_v47 = vmul.f32 %v3038_v33, %v899_v15 }
  0xb5   : > { %v601_v1 = vpop.f32.mrf.mxu0 }
  0xb6   : > { %v602_v5 = vadd.f32 %v3001_v3, %v601_v1  ;;  %v1014_v29 = vrot.slane %v965_v22, 1  ;;  %v1137_v52 = vrot.slane %v1088_v36, 2  ;;  %v702_v59 = vmax.f32 %v644_v40, 0.0 }
  0xb7   : > { %v3024_v25 = vpop.permute.xlu0 %810  ;;  %v3033_v32 = vpop.permute.xlu1 %815 }
  0xb8   : > { %2479 = vmatmul.msk.bf16.gmra.mxu0 %vm522_vm1, %v2557_v63  ;;  %2489 = vmatmul.msk.bf16.gmra.mxu3 %vm522_vm1, %v2567_v0  ;;  %v688_v12 = vmax.f32 %v602_v5, 0.0  ;;  %v1015_v43 = vsel %vm1012_vm2, %v1013_v35, %v1014_v29  ;;  %v1136_v0 = vrot.slane %v1087_v42, 2  ;;  %v2510_v42 = vld [vmem:[%s2920_s22 + $0x14] sm:$0xf] }
  0xba   : > { %v900_v16 = vmul.f32 %v761_v53, %v688_v12  ;;  %v1138_v11 = vsel %vm1135_vm3, %v1136_v0, %v1137_v52 }
  0xbb   : > { %v646_v6 = vpop.f32.mrf.mxu3 }
  0xbc   : > { %v966_v23 = vmul.f32 %v3017_v18, %v900_v16  ;;  %v647_v27 = vadd.f32 %v3001_v3, %v646_v6  ;;  %v1089_v37 = vmul.f32 %v3031_v28, %v900_v16 }
  0xbd   : > { %v603_v9 = vpop.f32.mrf.mxu0 }
  0xbe   : > { %v1016_v30 = vrot.slane %v966_v23, 1  ;;  %v703_v38 = vmax.f32 %v647_v27, 0.0  ;;  %v1139_v53 = vrot.slane %v1089_v37, 2 }
  0xbf   : > { %v826_v63 = vpop.permute.xlu0 %825 }
  0xc0   : > { %v1017_v44 = vsel %vm1012_vm2, %v1014_v29, %v1016_v30  ;;  %v3060_v56 = vmul.f32 %v836_v51, %v703_v38  ;;  %v1140_v12 = vsel %vm1135_vm3, %v1137_v52, %v1139_v53  ;;  %v3088_v23 = vmul.f32 %v826_v63, %v701_v57 }
  0xc1   : > { %v1070_v61 = vadd.f32 %v1017_v44, %v931_v47  ;;  %v1947_v47 = vshrl.u32 %v2510_v42, 16 }
  0xc2   : > { %4116 = vst [vmem:[#allocation7_spill] sm:$0xff] %v3060_v56  ;;  %v3084_v16 = vmul.f32 %v3017_v18, %v3060_v56  ;;  %v3099_v30 = vmul.f32 %v3031_v28, %v3060_v56  ;;  %v3113_v53 = vmul.f32 %v3052_v48, %v3060_v56 }
  0xc3   : > { %v648_v17 = vpop.f32.mrf.mxu3  ;;  %4118 = vst [vmem:[#allocation9_spill] sm:$0xff] %v3088_v23 }
  0xc4   : > { %4117 = vst [vmem:[#allocation8_spill] sm:$0xff] %v3084_v16  ;;  %v831_v17 = vpop.permute.xlu1 %830 }
  0xc5   : > { %v605_v20 = vpop.f32.mrf.mxu0  ;;  %4120 = vst [vmem:[#allocation11_spill] sm:$0xff] %v3099_v30 }
  0xc6   : > { %v606_v24 = vadd.f32 %v3001_v3, %v605_v20  ;;  %v3086_v20 = vadd.f32 %v1140_v12, %v1070_v61  ;;  %4121 = vst [vmem:[#allocation12_spill] sm:$0xff] %v3113_v53  ;;  %v1949_v61 = vrot.slane %v1947_v47, 4  ;;  %v2512_v53 = vld [vmem:[%s2920_s22 + $0x20] sm:$0xf] }
  0xc8   : > { %v689_v31 = vmax.f32 %v606_v24, 0.0  ;;  %v3090_v24 = vmul.f32 %v831_v17, %v702_v59 }
  0xca   : > { %v901_v45 = vmul.f32 %v766_v58, %v689_v31  ;;  %v1069_v58 = vadd.f32 %v1015_v43, %v930_v46  ;;  %4119 = vst [vmem:[#allocation10_spill] sm:$0xff] %v3090_v24  ;;  %v1943_v46 = vshll.u32 %v2510_v42, 16 }
  0xcb   : > { %v650_v34 = vpop.f32.mrf.mxu3 }
  0xcc   : > { %v3063_v1 = vmul.f32 %v3017_v18, %v901_v45  ;;  %v3066_v4 = vmul.f32 %v3031_v28, %v901_v45  ;;  %v3069_v5 = vmul.f32 %v3052_v48, %v901_v45  ;;  %v3072_v6 = vmul.f32 %v3057_v49, %v901_v45 }
  0xcd   : > { %v607_v41 = vpop.f32.mrf.mxu0  ;;  %v651_v8 = vadd.f32 %v3001_v3, %v650_v34  ;;  %v1192_v19 = vadd.f32 %v1138_v11, %v1069_v58  ;;  %v3093_v26 = vmul.f32 %v3038_v33, %v901_v45  ;;  %v1210_v37 = vmul.f32 %v3080_v13, %v901_v45 }
  0xce   : > { %v608_v54 = vadd.f32 %v3001_v3, %v607_v41  ;;  %v1018_v27 = vrot.slane %v3063_v1, 1  ;;  %v1141_v31 = vrot.slane %v3066_v4, 2  ;;  %v1292_v34 = vrot.slane %v3069_v5, 1  ;;  %v2509_v41 = vld [vmem:[%s2920_s22 + $0x10] sm:$0xf] }
  0xcf   : > { %v1414_v35 = vrot.slane %v3072_v6, 2  ;;  %v704_v36 = vmax.f32 %v651_v8, 0.0  ;;  %v1934_v43 = vshrl.u32 %v2509_v41, 16  ;;  %v1937_v44 = vshll.u32 %v2509_v41, 16  ;;  %v2511_v8 = vld [vmem:[%s2920_s22 + $0x18] sm:$0x1] }
  0xd0   : > { %v690_v15 = vmax.f32 %v608_v54, 0.0  ;;  %v841_v54 = vpop.permute.xlu0 %840  ;;  %v1945_v59 = vrot.slane %v1943_v46, 5  ;;  %v1226_v11 = vadd.f32 %v1210_v37, %v1192_v19 }
  0xd1   : > { %v1936_v57 = vrot.slane %v1934_v43, 4  ;;  %v1939_v58 = vrot.slane %v1937_v44, 5  ;;  %v3121_v0 = vmul.f32 %v841_v54, %v704_v36  ;;  %v2125_v54 = vld [vmem:[%s4076_s8] sm:$0xf] }
  0xd2   : > { %v902_v38 = vmul.f32 %v2982_v50, %v690_v15  ;;  %v3117_v50 = vmul.f32 %v3057_v49, %v3060_v56 }
  0xd3   : > { %v652_v9 = vpop.f32.mrf.mxu3  ;;  %4123 = vst [vmem:[#allocation14_spill] sm:$0xff] %v3121_v0  ;;  %v1940_v17 = vor.u32 %v1939_v58, %v1936_v57 }
  0xd4   : > { %4122 = vst [vmem:[#allocation13_spill] sm:$0xff] %v3117_v50  ;;  %v968_v41 = vmul.f32 %v3017_v18, %v902_v38  ;;  %v3128_v42 = vmul.f32 %v3031_v28, %v902_v38  ;;  %v1211_v19 = vmul.f32 %v3080_v13, %v902_v38 }
  0xd5   : > { %v610_v22 = vpop.f32.mrf.mxu0  ;;  %v1941_v36 = vrot.slane %v1940_v17, 4  ;;  %v933_v17 = vmul.f32 %v3038_v33, %v902_v38 }
  0xd6   : > { %v611_v29 = vadd.f32 %v3001_v3, %v610_v22  ;;  %v1950_v22 = vor.u32 %v1949_v61, %v1945_v59  ;;  %v1367_v61 = vmul.f32 %v3057_v49, %v902_v38  ;;  %v1227_v40 = vadd.f32 %v1211_v19, %v3086_v20 }
  0xd7   : > { %v1946_v57 = vsel %vm3133_vm6, %v1941_v36, %v1945_v59  ;;  %v2570_v59 = vld [vmem:[%s4074_s6 + $0x8] sm:$0xff]  ;;  %v851_v36 = vpop.permute.xlu2 %850 }
  0xd8   : > { %v691_v39 = vmax.f32 %v611_v29, 0.0  ;;  %v1953_v29 = vshll.u32 %v2511_v8, 16  ;;  %v1019_v8 = vrot.slane %v968_v41, 1  ;;  %1859 = vmatpush.bf16.msra.mxu1 %v2570_v59 }
  0xda   : > { %v903_v51 = vmul.f32 %v2988_v55, %v691_v39  ;;  %v1245_v55 = vmul.f32 %v3052_v48, %v902_v38  ;;  %v653_v39 = vadd.f32 %v3001_v3, %v652_v9  ;;  %v1951_v9 = vrot.slane %v1950_v22, 4 }
  0xdb   : > { %v655_v45 = vpop.f32.mrf.mxu3  ;;  %v1955_v58 = vrot.slane %v1953_v29, 5  ;;  %v2130_v29 = vunpack.c.l.b16 %v1946_v57  ;;  %v1415_v57 = vrot.slane %v1367_v61, 2  ;;  %v1020_v5 = vsel %vm1012_vm2, %v1018_v27, %v1019_v8  ;;  %v3181_v27 = vld [vmem:[%s4072_s4 + $0x6] ss:$0 sm:$0xff] }
  0xdc   : > { %v969_v63 = vmul.f32 %v3017_v18, %v903_v51  ;;  %v656_v12 = vadd.f32 %v3001_v3, %v655_v45  ;;  %v1246_v44 = vmul.f32 %v3052_v48, %v903_v51  ;;  %v1293_v46 = vrot.slane %v1245_v55, 1 }
  0xdd   : > { %v612_v15 = vpop.f32.mrf.mxu0  ;;  %v1092_v55 = vmul.f32 %v3031_v28, %v903_v51  ;;  %v1368_v22 = vmul.f32 %v3057_v49, %v903_v51 }
  0xde   : > { %v1021_v37 = vrot.slane %v969_v63, 1  ;;  %v706_v45 = vmax.f32 %v656_v12, 0.0  ;;  %v705_v63 = vmax.f32 %v653_v39, 0.0  ;;  %v2179_v15 = vsel %vm583_vm0, %v2125_v54, 0 }
  0xdf   : > { %v1142_v12 = vrot.slane %v3128_v42, 2  ;;  %2188 = vmatpush.bf16.msra.mxu2 %v2179_v15  ;;  %v1295_v41 = vrot.slane %v1246_v44, 1  ;;  %v1956_v54 = vsel %vm3133_vm6, %v1951_v9, %v1955_v58  ;;  %v1294_v38 = vsel %vm1012_vm2, %v1292_v34, %v1293_v46 }
  0xe0   : > { %v1022_v39 = vsel %vm1012_vm2, %v1019_v8, %v1021_v37  ;;  %v3157_v51 = vmul.f32 %v851_v36, %v706_v45  ;;  %v2131_v15 = vunpack.c.l.b16 %v1956_v54  ;;  %v1144_v43 = vrot.slane %v1092_v55, 2  ;;  %v2569_v45 = vld [vmem:[%s4074_s6] sm:$0xff]  ;;  %v3200_v55 = vld [vmem:[%s4072_s4 + $0x8] ss:$0 sm:$0xff] }
  0xe1   : > { %v1072_v9 = vadd.f32 %v1022_v39, %v933_v17  ;;  %v1417_v34 = vrot.slane %v1368_v22, 2  ;;  %v1348_v59 = vadd.f32 %v1294_v38, %v1226_v11  ;;  %v1296_v20 = vsel %vm1012_vm2, %v1293_v46, %v1295_v41  ;;  %1860 = vmatpush.bf16.msra.mxu1 %v2569_v45  ;;  %v3195_v8 = vld [vmem:[%s4072_s4 + $0x7] ss:$0 sm:$0xff] }
  0xe2   : > { %4126 = vst [vmem:[#allocation15_spill] sm:$0xff] %v3157_v51  ;;  %v2146_v58 = vpack.c.b16 %v2131_v15, %v2130_v29  ;;  %v3172_v61 = vmul.f32 %v3017_v18, %v3157_v51  ;;  %v3176_v1 = vmul.f32 %v3031_v28, %v3157_v51  ;;  %v3186_v11 = vmul.f32 %v3052_v48, %v3157_v51 }
  0xe3   : > { %v657_v52 = vpop.f32.mrf.mxu3  ;;  %v1416_v46 = vsel %vm1135_vm3, %v1414_v35, %v1415_v57  ;;  %v1143_v17 = vsel %vm1135_vm3, %v1141_v31, %v1142_v12  ;;  %v1145_v22 = vsel %vm1135_vm3, %v1142_v12, %v1144_v43  ;;  %v3209_v35 = vmul.f32 %v3057_v49, %v3157_v51 }
  0xe4   : > { %v846_v52 = vpop.permute.xlu1 %845  ;;  %4128 = vst [vmem:[#allocation17_spill] sm:$0xff] %v3172_v61  ;;  %2533 = vmatmul.msk.bf16.vlgmr.msra.gmra.mxu2 %vm522_vm1, %v2146_v58  ;;  %v1071_v29 = vadd.f32 %v1020_v5, %v3093_v26  ;;  %v1195_v39 = vadd.f32 %v1145_v22, %v1072_v9  ;;  %v1349_v36 = vadd.f32 %v1296_v20, %v1227_v40  ;;  %v856_v9 = vpop.permute.xlu0 %855 }
  0xe5   : > { %v614_v42 = vpop.f32.mrf.mxu0  ;;  %v3161_v44 = vmul.f32 %v846_v52, %v705_v63  ;;  %4129 = vst [vmem:[#allocation18_spill] sm:$0xff] %v3176_v1  ;;  %v1418_v54 = vsel %vm1135_vm3, %v1415_v57, %v1417_v34  ;;  %v1470_v38 = vadd.f32 %v1416_v46, %v1348_v59 }
  0xe6   : > { %v615_v37 = vadd.f32 %v3001_v3, %v614_v42  ;;  %4130 = vst [vmem:[#allocation19_spill] sm:$0xff] %v3186_v11  ;;  %v1471_v34 = vadd.f32 %v1418_v54, %v1349_v36  ;;  %v1194_v58 = vadd.f32 %v1143_v17, %v1071_v29 }
  0xe7   : > { %4127 = vst [vmem:[#allocation16_spill] sm:$0xff] %v3161_v44  ;;  %v2513_v44 = vld [vmem:[%s2920_s22 + $0x24] sm:$0xf] }
  0xe8   : > { %v692_v19 = vmax.f32 %v615_v37, 0.0  ;;  %4131 = vst [vmem:[#allocation20_spill] sm:$0xff] %v3209_v35 }
  0xea   : > { %v904_v6 = vmul.f32 %v2992_v62, %v692_v19 }
  0xeb   : > { %v659_v41 = vpop.f32.mrf.mxu3 }
  0xec   : > { %v660_v4 = vadd.f32 %v3001_v3, %v659_v41  ;;  %v1488_v62 = vmul.f32 %v3181_v27, %v904_v6  ;;  %v1522_v52 = vmul.f32 %v3195_v8, %v904_v6  ;;  %v1644_v26 = vmul.f32 %v3200_v55, %v904_v6  ;;  %v861_v63 = vpop.permute.xlu1 %860 }
  0xed   : > { %v616_v12 = vpop.f32.mrf.mxu0  ;;  %v1212_v40 = vmul.f32 %v3080_v13, %v904_v6  ;;  %v1247_v5 = vmul.f32 %v3052_v48, %v904_v6  ;;  %v1369_v45 = vmul.f32 %v3057_v49, %v904_v6  ;;  %v3226_v59 = vmul.f32 %v3038_v33, %v904_v6 }
  0xee   : > { %v707_v15 = vmax.f32 %v660_v4, 0.0  ;;  %v617_v57 = vadd.f32 %v3001_v3, %v616_v12  ;;  %v1504_v46 = vadd.f32 %v1488_v62, %v1470_v38  ;;  %v3231_v22 = vmul.f32 %v3017_v18, %v904_v6 }
  0xef   : > { %v1570_v41 = vrot.slane %v1522_v52, 1  ;;  %v1692_v4 = vrot.slane %v1644_v26, 2  ;;  %v1228_v12 = vadd.f32 %v1212_v40, %v1194_v58  ;;  %v3234_v43 = vmul.f32 %v3031_v28, %v904_v6 }
  0xf0   : > { %v693_v20 = vmax.f32 %v617_v57, 0.0  ;;  %v3228_v19 = vmul.f32 %v856_v9, %v707_v15  ;;  %v1297_v54 = vrot.slane %v1247_v5, 1  ;;  %v1419_v52 = vrot.slane %v1369_v45, 2 }
  0xf2   : > { %4132 = vst [vmem:[#allocation21_spill] sm:$0xff] %v3228_v19  ;;  %v3237_v17 = vmul.f32 %v2996_v2, %v693_v20  ;;  %v3241_v29 = vmul.f32 %v3017_v18, %v3228_v19  ;;  %v3245_v36 = vmul.f32 %v3031_v28, %v3228_v19  ;;  %v944_v62 = vmul.f32 %v3038_v33, %v3228_v19 }
  0xf3   : > { %v661_v38 = vpop.f32.mrf.mxu3 }
  0xf4   : > { %v662_v2 = vadd.f32 %v3001_v3, %v661_v38  ;;  %v1489_v40 = vmul.f32 %v3181_v27, %v3237_v17  ;;  %v1523_v15 = vmul.f32 %v3195_v8, %v3237_v17  ;;  %v1645_v57 = vmul.f32 %v3200_v55, %v3237_v17 }
  0xf5   : > { %v619_v5 = vpop.f32.mrf.mxu0  ;;  %v1048_v9 = vrot.slane %v3241_v29, 1  ;;  %v1213_v45 = vmul.f32 %v3080_v13, %v3237_v17  ;;  %v1248_v20 = vmul.f32 %v3052_v48, %v3237_v17  ;;  %v3269_v29 = vmul.f32 %v3057_v49, %v3237_v17 }
  0xf6   : > { %v708_v38 = vmax.f32 %v662_v2, 0.0  ;;  %v620_v31 = vadd.f32 %v3001_v3, %v619_v5  ;;  %v1505_v37 = vadd.f32 %v1489_v40, %v1471_v34  ;;  %v1571_v42 = vrot.slane %v1523_v15, 1 }
  0xf7   : > { %v1693_v26 = vrot.slane %v1645_v57, 2  ;;  %v3265_v6 = vadd.f32 %v1213_v45, %v1195_v39  ;;  %v1298_v1 = vrot.slane %v1248_v20, 1  ;;  %v3276_v2 = vmul.f32 %v3038_v33, %v3237_v17  ;;  %v3282_v39 = vld [vmem:[%s4073_s5] ss:$0 sm:$0xff] }
  0xf8   : > { %v694_v58 = vmax.f32 %v620_v31, 0.0  ;;  %v3271_v61 = vmul.f32 %v861_v63, %v708_v38  ;;  %v1572_v35 = vsel %vm1012_vm2, %v1570_v41, %v1571_v42  ;;  %v4084_v31 = vrot.slane %v3269_v29, 2 }
  0xf9   : > { %v1626_v34 = vadd.f32 %v1572_v35, %v1504_v46  ;;  %v1694_v40 = vsel %vm1135_vm3, %v1692_v4, %v1693_v26  ;;  %v1299_v15 = vsel %vm1012_vm2, %v1297_v54, %v1298_v1  ;;  %v3308_v5 = vmul.f32 %v3017_v18, %v3237_v17 }
  0xfa   : > { %4133 = vst [vmem:[#allocation22_spill] sm:$0xff] %v3271_v61  ;;  %v3287_v63 = vmul.f32 %v2990_v60, %v694_v58  ;;  %v3291_v41 = vmul.f32 %v3017_v18, %v3271_v61  ;;  %v3295_v35 = vmul.f32 %v3031_v28, %v3271_v61  ;;  %v3297_v46 = vadd.f32 %v1299_v15, %v1228_v12 }
  0xfb   : > { %v664_v4 = vpop.f32.mrf.mxu3  ;;  %v1748_v57 = vadd.f32 %v1694_v40, %v1626_v34  ;;  %v1421_v54 = vsel %vm1135_vm3, %v1419_v52, %v4084_v31  ;;  %v3304_v60 = vmul.f32 %v3038_v33, %v3271_v61 }
  0xfc   : > { %v3312_v58 = vmul.f32 %v3017_v18, %v3287_v63  ;;  %v3316_v12 = vmul.f32 %v3031_v28, %v3287_v63  ;;  %v1249_v45 = vmul.f32 %v3052_v48, %v3287_v63  ;;  %v665_v52 = vadd.f32 %v3001_v3, %v664_v4  ;;  %v866_v4 = vpop.permute.xlu2 %865 }
  0xfd   : > { %v621_v20 = vpop.f32.mrf.mxu0  ;;  %v1524_v38 = vmul.f32 %v3195_v8, %v3287_v63  ;;  %v1646_v34 = vmul.f32 %v3200_v55, %v3287_v63  ;;  %v1768_v40 = vadd.f32 %v3282_v39, %v1748_v57  ;;  %v1049_v15 = vrot.slane %v3291_v41, 1 }
  0xfe   : > { %v1300_v61 = vrot.slane %v1249_v45, 1  ;;  %v709_v19 = vmax.f32 %v665_v52, 0.0  ;;  %v1172_v57 = vrot.slane %v3295_v35, 2  ;;  %v1958_v52 = vshrl.u32 %v2512_v53, 16 }
  0xff   : > { %v1573_v30 = vrot.slane %v1524_v38, 1  ;;  %v1695_v20 = vrot.slane %v1646_v34, 2  ;;  %v1784_v16 = vmax.f32 %v1768_v40, 0.0  ;;  %v1050_v50 = vsel %vm1012_vm2, %v1048_v9, %v1049_v15 }
 0x100   : > { %v3330_v51 = vmul.f32 %v866_v4, %v709_v19  ;;  %v1083_v0 = vadd.f32 %v1050_v50, %v944_v62  ;;  %v1301_v41 = vsel %vm1012_vm2, %v1298_v1, %v1300_v61  ;;  %v1961_v38 = vshll.u32 %v2512_v53, 16  ;;  %v2514_v4 = vld [vmem:[%s2920_s22 + $0x28] sm:$0x1] }
 0x101   : > { %v1574_v31 = vsel %vm1012_vm2, %v1571_v42, %v1573_v30  ;;  %v1696_v45 = vsel %vm1135_vm3, %v1693_v26, %v1695_v20  ;;  %v1960_v1 = vrot.slane %v1958_v52, 4  ;;  %v1967_v42 = vshll.u32 %v2513_v44, 16 }
 0x102   : > { %4134 = vst [vmem:[#allocation23_spill] sm:$0xff] %v3330_v51  ;;  %v987_v9 = vmul.f32 %v3017_v18, %v3330_v51  ;;  %v1110_v19 = vmul.f32 %v3031_v28, %v3330_v51  ;;  %v3344_v50 = vmul.f32 %v3052_v48, %v3330_v51  ;;  %v1627_v62 = vadd.f32 %v1574_v31, %v1505_v37 }
 0x103   : > { %v666_v61 = vpop.f32.mrf.mxu3  ;;  %v1963_v30 = vrot.slane %v1961_v38, 5  ;;  %v1971_v26 = vshrl.u32 %v2513_v44, 16  ;;  %v1969_v56 = vrot.slane %v1967_v42, 5  ;;  %v1977_v23 = vshll.u32 %v2514_v4, 16 }
 0x104   : > { %v1051_v35 = vrot.slane %v987_v9, 1  ;;  %v1174_v34 = vrot.slane %v1110_v19, 2  ;;  %v1749_v40 = vadd.f32 %v1696_v45, %v1627_v62  ;;  %v4135_v31 = vrot.slane %v3245_v36, 2 }
 0x105   : > { %v623_v20 = vpop.f32.mrf.mxu0  ;;  %v1964_v11 = vor.u32 %v1963_v30, %v1960_v1  ;;  %v1973_v24 = vrot.slane %v1971_v26, 4  ;;  %v1351_v44 = vadd.f32 %v1301_v41, %v3265_v6  ;;  %v1979_v19 = vrot.slane %v1977_v23, 5 }
 0x106   : > { %v624_v51 = vadd.f32 %v3001_v3, %v623_v20  ;;  %v1769_v37 = vadd.f32 %v3282_v39, %v1749_v40  ;;  %v1173_v52 = vsel %vm1135_vm3, %v4135_v31, %v1172_v57  ;;  %v1371_v1 = vmul.f32 %v3057_v49, %v3287_v63 }
 0x107   : > { %v1965_v38 = vrot.slane %v1964_v11, 4  ;;  %v1974_v9 = vor.u32 %v1973_v24, %v1969_v56  ;;  %v1206_v45 = vadd.f32 %v1173_v52, %v1083_v0  ;;  %v1472_v30 = vadd.f32 %v1421_v54, %v3297_v46 }
 0x108   : > { %v695_v62 = vmax.f32 %v624_v51, 0.0  ;;  %v1785_v61 = vmax.f32 %v1769_v37, 0.0  ;;  %v1052_v36 = vsel %vm1012_vm2, %v1049_v15, %v1051_v35  ;;  %v1175_v40 = vsel %vm1135_vm3, %v1172_v57, %v1174_v34  ;;  %v871_v37 = vpop.permute.xlu0 %870 }
 0x109   : > { %v1970_v42 = vsel %vm3133_vm6, %v1965_v38, %v1969_v56  ;;  %v1975_v26 = vrot.slane %v1974_v9, 4  ;;  %v1422_v0 = vrot.slane %v1371_v1, 2  ;;  %v1084_v63 = vadd.f32 %v1052_v36, %v3304_v60 }
 0x10a   : > { %v3362_v11 = vmul.f32 %v3010_v10, %v695_v62  ;;  %v1800_v23 = vpack.c.bf16 %v1785_v61, %v1784_v16  ;;  %v2132_v24 = vunpack.c.l.b16 %v1970_v42  ;;  %v1024_v46 = vrot.slane %v3308_v5, 1 }
 0x10b   : > { %v668_v51 = vpop.f32.mrf.mxu3  ;;  %v1980_v6 = vsel %vm3133_vm6, %v1975_v26, %v1979_v19  ;;  %v1094_v56 = vmul.f32 %v3031_v28, %v3237_v17  ;;  %v4136_v16 = vrot.slane %v3269_v29, 2  ;;  %v3381_v5 = vadd.f32 %v1175_v40, %v1084_v63 }
 0x10c   : > { %v669_v54 = vadd.f32 %v3001_v3, %v668_v51  ;;  %2499 = vmatmul.msk.bf16.vlgmr.msra.gmra.mxu1 %vm1828_vm7, %v1800_v23  ;;  %v2133_v10 = vunpack.c.l.b16 %v1980_v6  ;;  %v1490_v57 = vmul.f32 %v3181_v27, %v3362_v11  ;;  %v1525_v60 = vmul.f32 %v3195_v8, %v3362_v11 }
 0x10d   : > { %v1423_v15 = vsel %vm1135_vm3, %v4136_v16, %v1422_v0  ;;  %v625_v41 = vpop.f32.mrf.mxu0  ;;  %v1647_v17 = vmul.f32 %v3200_v55, %v3362_v11  ;;  %v4137_v38 = vrot.slane %v3231_v22, 1  ;;  %v4138_v9 = vrot.slane %v3312_v58, 1 }
 0x10e   : > { %v1473_v35 = vadd.f32 %v1423_v15, %v1351_v44  ;;  %v710_v34 = vmax.f32 %v669_v54, 0.0  ;;  %v626_v4 = vadd.f32 %v3001_v3, %v625_v41  ;;  %v2147_v20 = vpack.c.b16 %v2133_v10, %v2132_v24 }
 0x10f   : > { %v1506_v29 = vadd.f32 %v1490_v57, %v1472_v30  ;;  %v1575_v31 = vrot.slane %v1525_v60, 1  ;;  %v1697_v52 = vrot.slane %v1647_v17, 2  ;;  %v1025_v44 = vsel %vm1012_vm2, %v4137_v38, %v1024_v46 }
 0x110   : > { %v1027_v19 = vsel %vm1012_vm2, %v1024_v46, %v4138_v9  ;;  %v3390_v62 = vmul.f32 %v871_v37, %v710_v34  ;;  %v696_v61 = vmax.f32 %v626_v4, 0.0  ;;  %2534 = vmatmul.msk.bf16.gmra.mxu2 %vm522_vm1, %v2147_v20  ;;  %v1073_v1 = vadd.f32 %v1025_v44, %v3226_v59  ;;  %v876_v34 = vpop.permute.xlu1 %875 }
 0x111   : > { %v1074_v30 = vadd.f32 %v1027_v19, %v3276_v2  ;;  %v1147_v42 = vrot.slane %v1094_v56, 2  ;;  %v1214_v26 = vmul.f32 %v3080_v13, %v3362_v11  ;;  %v3399_v22 = vmul.f32 %v3052_v48, %v3362_v11 }
 0x112   : > { %v3403_v58 = vmul.f32 %v3057_v49, %v3362_v11  ;;  %v3406_v36 = vmul.f32 %v3012_v14, %v696_v61  ;;  %v1224_v59 = vmul.f32 %v3080_v13, %v3390_v62  ;;  %v1265_v2 = vmul.f32 %v3052_v48, %v3390_v62 }
 0x113   : > { %v1387_v40 = vmul.f32 %v3057_v49, %v3390_v62  ;;  %v670_v23 = vpop.f32.mrf.mxu3  ;;  %v4139_v24 = vrot.slane %v3234_v43, 2  ;;  %v4140_v51 = vrot.slane %v3316_v12, 2  ;;  %v1302_v14 = vrot.slane %v3399_v22, 1 }
 0x114   : > { %v1424_v63 = vrot.slane %v3403_v58, 2  ;;  %v671_v46 = vadd.f32 %v3001_v3, %v670_v23  ;;  %v1240_v56 = vadd.f32 %v1224_v59, %v1206_v45  ;;  %v1327_v54 = vrot.slane %v1265_v2, 1 }
 0x115   : > { %v1148_v0 = vsel %vm1135_vm3, %v4139_v24, %v1147_v42  ;;  %v1150_v6 = vsel %vm1135_vm3, %v1147_v42, %v4140_v51  ;;  %v1449_v10 = vrot.slane %v1387_v40, 2  ;;  %v628_v16 = vpop.f32.mrf.mxu0  ;;  %v1491_v15 = vmul.f32 %v3181_v27, %v3406_v36 }
 0x116   : > { %v1526_v43 = vmul.f32 %v3195_v8, %v3406_v36  ;;  %v1648_v12 = vmul.f32 %v3200_v55, %v3406_v36  ;;  %v1196_v57 = vadd.f32 %v1148_v0, %v1073_v1  ;;  %v711_v41 = vmax.f32 %v671_v46, 0.0 }
 0x117   : > { %v629_v60 = vadd.f32 %v3001_v3, %v628_v16  ;;  %v1197_v17 = vadd.f32 %v1150_v6, %v1074_v30  ;;  %v1215_v45 = vmul.f32 %v3080_v13, %v3406_v36  ;;  %v1507_v4 = vadd.f32 %v1491_v15, %v1473_v35 }
 0x118   : > { %v1576_v20 = vrot.slane %v1526_v43, 1  ;;  %v1698_v37 = vrot.slane %v1648_v12, 2  ;;  %v3432_v38 = vadd.f32 %v1214_v26, %v1196_v57  ;;  %v3434_v44 = vmul.f32 %v876_v34, %v711_v41  ;;  %v2515_v57 = vld [vmem:[%s2920_s22 + $0x30] sm:$0xf]  ;;  %v881_v41 = vpop.permute.xlu2 %880 }
 0x119   : > { %v697_v9 = vmax.f32 %v629_v60, 0.0  ;;  %v3436_v19 = vadd.f32 %v1215_v45, %v1197_v17  ;;  %v3440_v61 = vmul.f32 %v3052_v48, %v3406_v36  ;;  %v3446_v35 = vmul.f32 %v3057_v49, %v3406_v36 }
 0x11a   : > { %v1577_v1 = vsel %vm1012_vm2, %v1575_v31, %v1576_v20  ;;  %v1699_v30 = vsel %vm1135_vm3, %v1697_v52, %v1698_v37  ;;  %v3450_v42 = vmul.f32 %v3038_v33, %v3362_v11  ;;  %v1266_v59 = vmul.f32 %v3052_v48, %v3434_v44 }
 0x11b   : > { %v3453_v26 = vmul.f32 %v3007_v7, %v697_v9  ;;  %v1388_v2 = vmul.f32 %v3057_v49, %v3434_v44  ;;  %v1628_v31 = vadd.f32 %v1577_v1, %v1506_v29  ;;  %v673_v40 = vpop.f32.mrf.mxu3  ;;  %v1225_v52 = vmul.f32 %v3080_v13, %v3434_v44 }
 0x11c   : > { %v1303_v23 = vrot.slane %v3440_v61, 1  ;;  %v1425_v24 = vrot.slane %v3446_v35, 2  ;;  %v3465_v7 = vmul.f32 %v3038_v33, %v3406_v36  ;;  %v674_v51 = vadd.f32 %v3001_v3, %v673_v40 }
 0x11d   : > { %v3469_v0 = vmul.f32 %v3017_v18, %v3453_v26  ;;  %v3473_v29 = vmul.f32 %v3031_v28, %v3453_v26  ;;  %v1252_v13 = vmul.f32 %v3052_v48, %v3453_v26  ;;  %v630_v6 = vpop.f32.mrf.mxu0  ;;  %v1328_v46 = vrot.slane %v1266_v59, 1 }
 0x11e   : > { %v1450_v16 = vrot.slane %v1388_v2, 2  ;;  %v1527_v33 = vmul.f32 %v3195_v8, %v3453_v26  ;;  %v1649_v15 = vmul.f32 %v3200_v55, %v3453_v26  ;;  %v712_v12 = vmax.f32 %v674_v51, 0.0 }
 0x11f   : > { %v1031_v18 = vrot.slane %v3469_v0, 1  ;;  %v1305_v28 = vrot.slane %v1252_v13, 1  ;;  %v1329_v60 = vsel %vm1012_vm2, %v1327_v54, %v1328_v46  ;;  %v1750_v59 = vadd.f32 %v1699_v30, %v1628_v31  ;;  %v3651_v0 = vld [vmem:[%s4072_s4 + $0x3] ss:$0 sm:$0xff] }
 0x120   : > { %v1451_v17 = vsel %vm1135_vm3, %v1449_v10, %v1450_v16  ;;  %v1578_v45 = vrot.slane %v1527_v33, 1  ;;  %v1700_v34 = vrot.slane %v1649_v15, 2  ;;  %v924_v9 = vmul.f32 %v881_v41, %v712_v12 }
 0x121   : > { %v1362_v1 = vadd.f32 %v1329_v60, %v1240_v56  ;;  %v1241_v2 = vadd.f32 %v1225_v52, %v3381_v5  ;;  %v1982_v13 = vshrl.u32 %v2515_v57, 16  ;;  %v1985_v51 = vshll.u32 %v2515_v57, 16  ;;  %v2516_v56 = vld [vmem:[%s2920_s22 + $0x34] sm:$0xf] }
 0x122   : > { %v1579_v40 = vsel %vm1012_vm2, %v1576_v20, %v1578_v45  ;;  %v1701_v6 = vsel %vm1135_vm3, %v1698_v37, %v1700_v34  ;;  %v1267_v53 = vmul.f32 %v3052_v48, %v924_v9  ;;  %v1389_v54 = vmul.f32 %v3057_v49, %v924_v9  ;;  %v2517_v34 = vld [vmem:[%s2920_s22 + $0x38] sm:$0x1] }
 0x123   : > { %v3493_v10 = vmul.f32 %v3195_v8, %v924_v9  ;;  %v3496_v33 = vmul.f32 %v3200_v55, %v924_v9  ;;  %v675_v30 = vpop.f32.mrf.mxu3  ;;  %v3499_v5 = vadd.f32 %v1451_v17, %v1362_v1  ;;  %v1629_v20 = vadd.f32 %v1579_v40, %v1507_v4 }
 0x124   : > { %v1770_v37 = vadd.f32 %v3282_v39, %v1750_v59  ;;  %v1984_v31 = vrot.slane %v1982_v13, 4  ;;  %v1330_v52 = vrot.slane %v1267_v53, 1  ;;  %v1452_v15 = vrot.slane %v1389_v54, 2 }
 0x125   : > { %v632_v41 = vpop.f32.mrf.mxu0  ;;  %v1751_v60 = vadd.f32 %v1701_v6, %v1629_v20  ;;  %v1987_v9 = vrot.slane %v1985_v51, 5  ;;  %v1991_v43 = vshll.u32 %v2516_v56, 16  ;;  %v1995_v1 = vshrl.u32 %v2516_v56, 16 }
 0x126   : > { %v1786_v45 = vmax.f32 %v1770_v37, 0.0  ;;  %v633_v30 = vadd.f32 %v3001_v3, %v632_v41  ;;  %v1331_v17 = vsel %vm1012_vm2, %v1328_v46, %v1330_v52  ;;  %v1453_v4 = vsel %vm1135_vm3, %v1450_v16, %v1452_v15 }
 0x127   : > { %v1771_v53 = vadd.f32 %v3282_v39, %v1751_v60  ;;  %v1363_v59 = vadd.f32 %v1331_v17, %v1241_v2  ;;  %v1988_v40 = vor.u32 %v1987_v9, %v1984_v31  ;;  %v1993_v13 = vrot.slane %v1991_v43, 5 }
 0x128   : > { %v698_v54 = vmax.f32 %v633_v30, 0.0  ;;  %v1997_v57 = vrot.slane %v1995_v1, 4  ;;  %v2001_v12 = vshll.u32 %v2517_v34, 16  ;;  %v1304_v6 = vsel %vm1012_vm2, %v1302_v14, %v1303_v23  ;;  %v886_v34 = vpop.permute.xlu0 %885 }
 0x129   : > { %v1787_v51 = vmax.f32 %v1771_v53, 0.0  ;;  %v3514_v20 = vadd.f32 %v1453_v4, %v1363_v59  ;;  %v1989_v46 = vrot.slane %v1988_v40, 4  ;;  %v1306_v16 = vsel %vm1012_vm2, %v1303_v23, %v1305_v28 }
 0x12a   : > { %v3520_v2 = vmul.f32 %v3024_v25, %v698_v54  ;;  %v1998_v43 = vor.u32 %v1997_v57, %v1993_v13  ;;  %v2003_v56 = vrot.slane %v2001_v12, 5  ;;  %v1352_v37 = vadd.f32 %v1304_v6, %v3432_v38 }
 0x12b   : > { %v677_v31 = vpop.f32.mrf.mxu3  ;;  %v1801_v52 = vpack.c.bf16 %v1787_v51, %v1786_v45  ;;  %v1994_v22 = vsel %vm3133_vm6, %v1989_v46, %v1993_v13  ;;  %v1353_v14 = vadd.f32 %v1306_v16, %v3436_v19  ;;  %v1374_v61 = vmul.f32 %v3057_v49, %v3453_v26  ;;  %v2519_v45 = vld [vmem:[%s2920_s22 + $0x44] sm:$0xf] }
 0x12c   : > { %v678_v23 = vadd.f32 %v3001_v3, %v677_v31  ;;  %v1999_v25 = vrot.slane %v1998_v43, 4  ;;  %v2134_v28 = vunpack.c.l.b16 %v1994_v22  ;;  %v1426_v38 = vsel %vm1135_vm3, %v1424_v63, %v1425_v24  ;;  %v2518_v63 = vld [vmem:[%s2920_s22 + $0x40] sm:$0xf]  ;;  %v2520_v43 = vld [vmem:[%s2920_s22 + $0x48] sm:$0x1] }
 0x12d   : > { %2500 = vmatmul.msk.bf16.gmra.mxu1 %vm1828_vm7, %v1801_v52  ;;  %v634_v15 = vpop.f32.mrf.mxu0  ;;  %v1427_v12 = vrot.slane %v1374_v61, 2  ;;  %v1474_v19 = vadd.f32 %v1426_v38, %v1352_v37  ;;  %v1492_v57 = vmul.f32 %v3181_v27, %v3520_v2  ;;  %v1528_v49 = vmul.f32 %v3195_v8, %v3520_v2 }
 0x12e   : > { %v713_v26 = vmax.f32 %v678_v23, 0.0  ;;  %v635_v41 = vadd.f32 %v3001_v3, %v634_v15  ;;  %v2004_v60 = vsel %vm3133_vm6, %v1999_v25, %v2003_v56  ;;  %v1650_v58 = vmul.f32 %v3200_v55, %v3520_v2 }
 0x12f   : > { %v2135_v9 = vunpack.c.l.b16 %v2004_v60  ;;  %v1428_v30 = vsel %vm1135_vm3, %v1425_v24, %v1427_v12  ;;  %v1508_v17 = vadd.f32 %v1492_v57, %v1474_v19  ;;  %v1580_v4 = vrot.slane %v1528_v49, 1 }
 0x130   : > { %v925_v1 = vmul.f32 %v886_v34, %v713_v26  ;;  %v699_v53 = vmax.f32 %v635_v41, 0.0  ;;  %v1475_v3 = vadd.f32 %v1428_v30, %v1353_v14  ;;  %v1702_v59 = vrot.slane %v1650_v58, 2  ;;  %v891_v26 = vpop.permute.xlu1 %890 }
 0x131   : > { %v2148_v40 = vpack.c.b16 %v2135_v9, %v2134_v28  ;;  %v2006_v13 = vshrl.u32 %v2518_v63, 16  ;;  %v2009_v54 = vshll.u32 %v2518_v63, 16  ;;  %v2015_v6 = vshll.u32 %v2519_v45, 16 }
 0x132   : > { %v1502_v51 = vmul.f32 %v3181_v27, %v925_v1  ;;  %v3551_v46 = vmul.f32 %v3195_v8, %v925_v1  ;;  %v3554_v35 = vmul.f32 %v3200_v55, %v925_v1  ;;  %v3557_v24 = vmul.f32 %v3033_v32, %v699_v53  ;;  %v2665_v32 = vld [vmem:[%s4115_s3] ss:$0 sm:$0xff]  ;;  %s2690_s3 = sshra.s32 %s2297_s0, 4  ;;  %s2691_s3 = int_to_ptr.hbm [resolvable:$true] %s2690_s3 }
 0x133   : > { %v679_v16 = vpop.f32.mrf.mxu3  ;;  %2535 = vmatmul.msk.bf16.gmra.mxu2 %vm522_vm1, %v2148_v40  ;;  %v2008_v56 = vrot.slane %v2006_v13, 4  ;;  %v2011_v37 = vrot.slane %v2009_v54, 5  ;;  %v2017_v31 = vrot.slane %v2015_v6, 5  ;;  %v2019_v52 = vshrl.u32 %v2519_v45, 16  ;;  %v3582_v13 = vld [vmem:[%s4072_s4 + $0x1] ss:$0 sm:$0xff]  ;;  %p2697_p2 = scmp.lt.s32.totalorder %s2691_s3, %s4078_s10 }
 0x134   : > { %v3562_v22 = vadd.f32 %v1502_v51, %v3499_v5  ;;  %v1605_v14 = vrot.slane %v3551_v46, 1  ;;  %v1727_v61 = vrot.slane %v3554_v35, 2  ;;  %v680_v23 = vadd.f32 %v2665_v32, %v679_v16  ;;  %s2692_s17 = scalar_lea.hbm %s2691_s3, 16 }
 0x135   : > { %v637_v25 = vpop.f32.mrf.mxu0  ;;  %v1493_v28 = vmul.f32 %v3181_v27, %v3557_v24  ;;  %v1529_v38 = vmul.f32 %v3195_v8, %v3557_v24  ;;  %v1651_v5 = vmul.f32 %v3200_v55, %v3557_v24  ;;  %v2012_v15 = vor.u32 %v2011_v37, %v2008_v56  ;;  %p2693_p13 = scmp.ne.s32.totalorder %s2691_s3, %s2692_s17 }
 0x136   : > { %v714_v12 = vmax.f32 %v680_v23, 0.0  ;;  %v638_v19 = vadd.f32 %v2665_v32, %v637_v25  ;;  %v2021_v57 = vrot.slane %v2019_v52, 4  ;;  %v2025_v49 = vshll.u32 %v2520_v43, 16 }
 0x137   : > { %v1509_v41 = vadd.f32 %v1493_v28, %v1475_v3  ;;  %v1581_v60 = vrot.slane %v1529_v38, 1  ;;  %v1703_v58 = vrot.slane %v1651_v5, 2  ;;  %v2013_v63 = vrot.slane %v2012_v15, 4  ;;  %p2694_p0 = pnand %p2693_p13, %p2882_p3 }
 0x138   : > { %v926_v45 = vmul.f32 %v891_v26, %v714_v12  ;;  %v700_v34 = vmax.f32 %v638_v19, 0.0  ;;  %v2022_v9 = vor.u32 %v2021_v57, %v2017_v31  ;;  %v2027_v30 = vrot.slane %v2025_v49, 5 }
 0x139   : > { %v1582_v1 = vsel %vm1012_vm2, %v1580_v4, %v1581_v60  ;;  %v1704_v53 = vsel %vm1135_vm3, %v1702_v59, %v1703_v58  ;;  %v2018_v40 = vsel %vm3133_vm6, %v2013_v63, %v2017_v31  ;;  %v973_v3 = vmul.f32 %v3582_v13, %v3362_v11  ;;  %p2695_p1 = pneg %p2694_p0 }
 0x13a   : > { %v1503_v54 = vmul.f32 %v3181_v27, %v926_v45  ;;  %v3588_v6 = vmul.f32 %v3195_v8, %v926_v45  ;;  %v3591_v4 = vmul.f32 %v3200_v55, %v926_v45  ;;  %v3594_v59 = vmul.f32 %v3019_v21, %v700_v34  ;;  %v3610_v21 = vld [vmem:[%s4072_s4 + $0x2] ss:$0 sm:$0xff] }
 0x13b   : > { %v682_v51 = vpop.f32.mrf.mxu3  ;;  %v1630_v16 = vadd.f32 %v1582_v1, %v1508_v17  ;;  %v2023_v43 = vrot.slane %v2022_v9, 4  ;;  %v2136_v56 = vunpack.c.l.b16 %v2018_v40  ;;  %v974_v37 = vmul.f32 %v3582_v13, %v3406_v36 }
 0x13c   : > { %v3599_v31 = vadd.f32 %v1503_v54, %v3514_v20  ;;  %v1606_v52 = vrot.slane %v3588_v6, 1  ;;  %v1728_v23 = vrot.slane %v3591_v4, 2  ;;  %v3605_v25 = vmul.f32 %v3582_v13, %v3594_v59 }
 0x13d   : > { %v3614_v17 = vmul.f32 %v3610_v21, %v3594_v59  ;;  %v3618_v20 = vmul.f32 %v3052_v48, %v3594_v59  ;;  %v683_v28 = vadd.f32 %v2665_v32, %v682_v51  ;;  %v639_v38 = vpop.f32.mrf.mxu0  ;;  %v1530_v5 = vmul.f32 %v3195_v8, %v3594_v59  ;;  %v896_v32 = vpop.permute.xlu2 %895 }
 0x13e   : > { %v1036_v15 = vrot.slane %v3605_v25, 1  ;;  %v1652_v12 = vmul.f32 %v3200_v55, %v3594_v59  ;;  %v1752_v19 = vadd.f32 %v1704_v53, %v1630_v16  ;;  %v2028_v57 = vsel %vm3133_vm6, %v2023_v43, %v2027_v30 }
 0x13f   : > { %v1159_v49 = vrot.slane %v3614_v17, 2  ;;  %v1310_v26 = vrot.slane %v3618_v20, 1  ;;  %v715_v48 = vmax.f32 %v683_v28, 0.0  ;;  %v1583_v63 = vrot.slane %v1530_v5, 1 }
 0x140   : > { %v1705_v45 = vrot.slane %v1652_v12, 2  ;;  %v1772_v34 = vadd.f32 %v3282_v39, %v1752_v19  ;;  %v2137_v9 = vunpack.c.l.b16 %v2028_v57  ;;  %v1028_v1 = vrot.slane %v973_v3, 1 }
 0x141   : > { %v927_v40 = vmul.f32 %v896_v32, %v715_v48  ;;  %v1584_v54 = vsel %vm1012_vm2, %v1581_v60, %v1583_v63  ;;  %v1029_v51 = vrot.slane %v974_v37, 1  ;;  %v1096_v53 = vmul.f32 %v3610_v21, %v3362_v11 }
 0x142   : > { %v1631_v30 = vadd.f32 %v1584_v54, %v1509_v41  ;;  %v1706_v16 = vsel %vm1135_vm3, %v1703_v58, %v1705_v45  ;;  %v1788_v43 = vmax.f32 %v1772_v34, 0.0  ;;  %v2149_v20 = vpack.c.b16 %v2137_v9, %v2136_v56  ;;  %v3675_v45 = vld [vmem:[%s4072_s4 + $0x5] ss:$0 sm:$0xff] }
 0x143   : > { %v1545_v28 = vmul.f32 %v3195_v8, %v927_v40  ;;  %v3636_v38 = vmul.f32 %v3200_v55, %v927_v40  ;;  %v1030_v5 = vsel %vm1012_vm2, %v1028_v1, %v1029_v51  ;;  %v1032_v60 = vsel %vm1012_vm2, %v1029_v51, %v1031_v18  ;;  %v684_v3 = vpop.f32.mrf.mxu3 }
 0x144   : > { %v1753_v37 = vadd.f32 %v1706_v16, %v1631_v30  ;;  %2536 = vmatmul.msk.bf16.gmra.mxu2 %vm522_vm1, %v2149_v20  ;;  %v1075_v11 = vadd.f32 %v1030_v5, %v3450_v42  ;;  %v1076_v41 = vadd.f32 %v1032_v60, %v3465_v7  ;;  %v1097_v58 = vmul.f32 %v3610_v21, %v3406_v36  ;;  %v3661_v36 = vld [vmem:[%s4072_s4 + $0x4] ss:$0 sm:$0xff] }
 0x145   : > { %v1608_v56 = vrot.slane %v1545_v28, 1  ;;  %v1730_v12 = vrot.slane %v3636_v38, 2  ;;  %v1151_v19 = vrot.slane %v1096_v53, 2  ;;  %v1216_v18 = vmul.f32 %v3651_v0, %v3520_v2 }
 0x146   : > { %v1773_v57 = vadd.f32 %v3282_v39, %v1753_v37  ;;  %v1152_v42 = vrot.slane %v1097_v58, 2  ;;  %v1217_v7 = vmul.f32 %v3651_v0, %v3557_v24  ;;  %v1253_v48 = vmul.f32 %v3661_v36, %v3520_v2  ;;  %v4142_v37 = vld [vmem:[#allocation9_spill] sm:$0xff] }
 0x147   : > { %v3668_v63 = vsel %vm1012_vm2, %v1606_v52, %v1608_v56  ;;  %v1254_v32 = vmul.f32 %v3661_v36, %v3557_v24  ;;  %v1375_v34 = vmul.f32 %v3675_v45, %v3520_v2  ;;  %v1376_v9 = vmul.f32 %v3675_v45, %v3557_v24 }
 0x148   : > { %v1789_v1 = vmax.f32 %v1773_v57, 0.0  ;;  %v1153_v40 = vsel %vm1135_vm3, %v1151_v19, %v1152_v42  ;;  %v4141_v54 = vrot.slane %v3473_v29, 2  ;;  %v1307_v53 = vrot.slane %v1253_v48, 1 }
 0x149   : > { %v1198_v30 = vadd.f32 %v1153_v40, %v1075_v11  ;;  %v1308_v20 = vrot.slane %v1254_v32, 1  ;;  %v1377_v28 = vmul.f32 %v3675_v45, %v3594_v59  ;;  %v1429_v60 = vrot.slane %v1375_v34, 2  ;;  %v2521_v34 = vld [vmem:[%s2920_s22 + $0x50] sm:$0xf] }
 0x14a   : > { %v1155_v51 = vsel %vm1135_vm3, %v1152_v42, %v4141_v54  ;;  %v1802_v5 = vpack.c.bf16 %v1789_v1, %v1788_v43  ;;  %v1430_v3 = vrot.slane %v1376_v9, 2  ;;  %v1494_v58 = vmul.f32 %v3181_v27, %v4142_v37  ;;  %v4143_v42 = vld [vmem:[#allocation10_spill] sm:$0xff] }
 0x14b   : > { %v1199_v16 = vadd.f32 %v1155_v51, %v1076_v41  ;;  %v1232_v56 = vadd.f32 %v1216_v18, %v1198_v30  ;;  %v1309_v29 = vsel %vm1012_vm2, %v1307_v53, %v1308_v20  ;;  %v1311_v57 = vsel %vm1012_vm2, %v1308_v20, %v1310_v26 }
 0x14c   : > { %2501 = vmatmul.msk.bf16.gmra.mxu1 %vm1828_vm7, %v1802_v5  ;;  %v1431_v11 = vsel %vm1135_vm3, %v1429_v60, %v1430_v3  ;;  %v1432_v41 = vrot.slane %v1377_v28, 2  ;;  %v1495_v59 = vmul.f32 %v3181_v27, %v4143_v42  ;;  %v1531_v43 = vmul.f32 %v3195_v8, %v4142_v37  ;;  %v2522_v28 = vld [vmem:[%s2920_s22 + $0x54] sm:$0xf] }
 0x14d   : > { %v1233_v19 = vadd.f32 %v1217_v7, %v1199_v16  ;;  %v1354_v48 = vadd.f32 %v1309_v29, %v1232_v56  ;;  %v1532_v18 = vmul.f32 %v3195_v8, %v4143_v42  ;;  %v4144_v7 = vld [vmem:[#allocation7_spill] sm:$0xff]  ;;  %v1653_v27 = vmul.f32 %v3200_v55, %v4142_v37  ;;  %v2523_v29 = vld [vmem:[%s2920_s22 + $0x58] sm:$0x1] }
 0x14e   : > { %v1533_v26 = vmul.f32 %v3195_v8, %v4144_v7  ;;  %v1433_v9 = vsel %vm1135_vm3, %v1430_v3, %v1432_v41  ;;  %v1585_v1 = vrot.slane %v1531_v43, 1  ;;  %v1654_v40 = vmul.f32 %v3200_v55, %v4143_v42 }
 0x14f   : > { %v1355_v32 = vadd.f32 %v1311_v57, %v1233_v19  ;;  %v1476_v54 = vadd.f32 %v1431_v11, %v1354_v48  ;;  %v1586_v53 = vrot.slane %v1532_v18, 1  ;;  %v1655_v16 = vmul.f32 %v3200_v55, %v4144_v7 }
 0x150   : > { %v1588_v30 = vrot.slane %v1533_v26, 1  ;;  %v1707_v20 = vrot.slane %v1653_v27, 2  ;;  %v1708_v8 = vrot.slane %v1654_v40, 2  ;;  %v2030_v5 = vshrl.u32 %v2521_v34, 16 }
 0x151   : > { %v1477_v51 = vadd.f32 %v1433_v9, %v1355_v32  ;;  %v1510_v60 = vadd.f32 %v1494_v58, %v1476_v54  ;;  %v1587_v56 = vsel %vm1012_vm2, %v1585_v1, %v1586_v53  ;;  %v1710_v11 = vrot.slane %v1655_v16, 2  ;;  %v3718_v58 = vld [vmem:[%s4072_s4] ss:$0 sm:$0xff] }
 0x152   : > { %v1589_v19 = vsel %vm1012_vm2, %v1586_v53, %v1588_v30  ;;  %v1709_v57 = vsel %vm1135_vm3, %v1707_v20, %v1708_v8  ;;  %v2032_v41 = vrot.slane %v2030_v5, 4  ;;  %v2033_v43 = vshll.u32 %v2521_v34, 16 }
 0x153   : > { %v1511_v3 = vadd.f32 %v1495_v59, %v1477_v51  ;;  %v1632_v48 = vadd.f32 %v1587_v56, %v1510_v60  ;;  %v2039_v18 = vshll.u32 %v2522_v28, 16  ;;  %v2043_v55 = vshrl.u32 %v2522_v28, 16 }
 0x154   : > { %v1711_v7 = vsel %vm1135_vm3, %v1708_v8, %v1710_v11  ;;  %v2035_v26 = vrot.slane %v2033_v43, 5  ;;  %v2049_v9 = vshll.u32 %v2523_v29, 16  ;;  %v938_v59 = vmul.f32 %v3718_v58, %v3520_v2 }
 0x155   : > { %v1633_v32 = vadd.f32 %v1589_v19, %v1511_v3  ;;  %v1754_v1 = vadd.f32 %v1709_v57, %v1632_v48  ;;  %v2041_v40 = vrot.slane %v2039_v18, 5  ;;  %v2045_v34 = vrot.slane %v2043_v55, 4 }
 0x156   : > { %v2036_v54 = vor.u32 %v2035_v26, %v2032_v41  ;;  %v2051_v51 = vrot.slane %v2049_v9, 5  ;;  %v939_v53 = vmul.f32 %v3718_v58, %v3557_v24  ;;  %v976_v30 = vmul.f32 %v3582_v13, %v3520_v2 }
 0x157   : > { %v1755_v27 = vadd.f32 %v1711_v7, %v1633_v32  ;;  %v1774_v16 = vadd.f32 %v3282_v39, %v1754_v1  ;;  %v2046_v8 = vor.u32 %v2045_v34, %v2041_v40  ;;  %v977_v28 = vmul.f32 %v3582_v13, %v3557_v24 }
 0x158   : > { %v2037_v5 = vrot.slane %v2036_v54, 4  ;;  %v1033_v60 = vrot.slane %v976_v30, 1  ;;  %v1099_v3 = vmul.f32 %v3610_v21, %v3520_v2  ;;  %v1100_v56 = vmul.f32 %v3610_v21, %v3557_v24  ;;  %v4145_v30 = vld [vmem:[#allocation14_spill] sm:$0xff] }
 0x159   : > { %v1775_v20 = vadd.f32 %v3282_v39, %v1755_v27  ;;  %v1790_v19 = vmax.f32 %v1774_v16, 0.0  ;;  %v2047_v57 = vrot.slane %v2046_v8, 4  ;;  %v1034_v11 = vrot.slane %v977_v28, 1 }
 0x15a   : > { %v2042_v41 = vsel %vm3133_vm6, %v2037_v5, %v2041_v40  ;;  %v1156_v39 = vrot.slane %v1099_v3, 2  ;;  %v1157_v43 = vrot.slane %v1100_v56, 2  ;;  %v1218_v48 = vmul.f32 %v3651_v0, %v4142_v37  ;;  %v4146_v5 = vld [vmem:[#allocation16_spill] sm:$0xff] }
 0x15b   : > { %v1791_v29 = vmax.f32 %v1775_v20, 0.0  ;;  %v2052_v18 = vsel %vm3133_vm6, %v2047_v57, %v2051_v51  ;;  %v2138_v2 = vunpack.c.l.b16 %v2042_v41  ;;  %v1035_v55 = vsel %vm1012_vm2, %v1033_v60, %v1034_v11  ;;  %v4147_v41 = vld [vmem:[#allocation12_spill] sm:$0xff] }
 0x15c   : > { %v2139_v24 = vunpack.c.l.b16 %v2052_v18  ;;  %v1037_v7 = vsel %vm1012_vm2, %v1034_v11, %v1036_v15  ;;  %v1077_v26 = vadd.f32 %v1035_v55, %v938_v59  ;;  %v1158_v9 = vsel %vm1135_vm3, %v1156_v39, %v1157_v43  ;;  %v3787_v18 = vld [vmem:[%s4072_s4 + $0x8] ss:$0 sm:$0xff] }
 0x15d   : > { %v1803_v32 = vpack.c.bf16 %v1791_v29, %v1790_v19  ;;  %v1078_v1 = vadd.f32 %v1037_v7, %v939_v53  ;;  %v1160_v27 = vsel %vm1135_vm3, %v1157_v43, %v1159_v49  ;;  %v1219_v40 = vmul.f32 %v3651_v0, %v4143_v42  ;;  %v3762_v49 = vld [vmem:[%s4072_s4 + $0x6] ss:$0 sm:$0xff]  ;;  %v3772_v19 = vld [vmem:[%s4072_s4 + $0x7] ss:$0 sm:$0xff] }
 0x15e   : > { %v1256_v34 = vmul.f32 %v3661_v36, %v4142_v37  ;;  %v2150_v54 = vpack.c.b16 %v2139_v24, %v2138_v2  ;;  %v1200_v25 = vadd.f32 %v1158_v9, %v1077_v26  ;;  %v1257_v15 = vmul.f32 %v3661_v36, %v4143_v42  ;;  %v4150_v26 = vld [vmem:[#allocation13_spill] sm:$0xff] }
 0x15f   : > { %2502 = vmatmul.msk.bf16.gmra.mxu1 %vm1828_vm7, %v1803_v32  ;;  %v1378_v59 = vmul.f32 %v3675_v45, %v4142_v37  ;;  %v1201_v51 = vadd.f32 %v1160_v27, %v1078_v1  ;;  %v1379_v17 = vmul.f32 %v3675_v45, %v4143_v42  ;;  %v1496_v16 = vmul.f32 %v3762_v49, %v4145_v30  ;;  %v2524_v27 = vld [vmem:[%s2920_s22 + $0x60] sm:$0xf] }
 0x160   : > { %v1312_v53 = vrot.slane %v1256_v34, 1  ;;  %2537 = vmatmul.msk.bf16.gmra.mxu2 %vm522_vm1, %v2150_v54  ;;  %v1234_v20 = vadd.f32 %v1218_v48, %v1200_v25  ;;  %v1313_v8 = vrot.slane %v1257_v15, 1  ;;  %v1497_v60 = vmul.f32 %v3762_v49, %v4146_v5  ;;  %v4149_v48 = vld [vmem:[#allocation15_spill] sm:$0xff] }
 0x161   : > { %v1434_v28 = vrot.slane %v1378_v59, 2  ;;  %v1235_v3 = vadd.f32 %v1219_v40, %v1201_v51  ;;  %v1435_v56 = vrot.slane %v1379_v17, 2  ;;  %v1534_v29 = vmul.f32 %v3772_v19, %v4145_v30  ;;  %v2525_v17 = vld [vmem:[%s2920_s22 + $0x64] sm:$0xf] }
 0x162   : > { %v1535_v57 = vmul.f32 %v3772_v19, %v4146_v5  ;;  %v1314_v11 = vsel %vm1012_vm2, %v1312_v53, %v1313_v8  ;;  %v4148_v39 = vrot.slane %v4147_v41, 1  ;;  %v1536_v32 = vmul.f32 %v3772_v19, %v4149_v48 }
 0x163   : > { %v1656_v2 = vmul.f32 %v3787_v18, %v4145_v30  ;;  %v1356_v55 = vadd.f32 %v1314_v11, %v1234_v20  ;;  %v1436_v7 = vsel %vm1135_vm3, %v1434_v28, %v1435_v56  ;;  %v4151_v9 = vrot.slane %v4150_v26, 2  ;;  %v2526_v11 = vld [vmem:[%s2920_s22 + $0x68] sm:$0x1] }
 0x164   : > { %v1316_v43 = vsel %vm1012_vm2, %v1313_v8, %v4148_v39  ;;  %v1590_v40 = vrot.slane %v1534_v29, 1  ;;  %v1591_v34 = vrot.slane %v1535_v57, 1  ;;  %v1593_v54 = vrot.slane %v1536_v32, 1 }
 0x165   : > { %v1357_v24 = vadd.f32 %v1316_v43, %v1235_v3  ;;  %v1438_v1 = vsel %vm1135_vm3, %v1435_v56, %v4151_v9  ;;  %v1657_v25 = vmul.f32 %v3787_v18, %v4146_v5  ;;  %v1478_v15 = vadd.f32 %v1436_v7, %v1356_v55 }
 0x166   : > { %v1658_v51 = vmul.f32 %v3787_v18, %v4149_v48  ;;  %v1712_v53 = vrot.slane %v1656_v2, 2  ;;  %v1592_v20 = vsel %vm1012_vm2, %v1590_v40, %v1591_v34  ;;  %v1594_v8 = vsel %vm1012_vm2, %v1591_v34, %v1593_v54 }
 0x167   : > { %v1479_v59 = vadd.f32 %v1438_v1, %v1357_v24  ;;  %v1713_v28 = vrot.slane %v1657_v25, 2  ;;  %v2054_v3 = vshrl.u32 %v2524_v27, 16  ;;  %v1512_v56 = vadd.f32 %v1496_v16, %v1478_v15 }
 0x168   : > { %v1715_v57 = vrot.slane %v1658_v51, 2  ;;  %v2057_v41 = vshll.u32 %v2524_v27, 16  ;;  %v2063_v32 = vshll.u32 %v2525_v17, 16  ;;  %v2067_v55 = vshrl.u32 %v2525_v17, 16  ;;  %v3817_v51 = vld [vmem:[%s4073_s5] ss:$0 sm:$0xff] }
 0x169   : > { %v1513_v29 = vadd.f32 %v1497_v60, %v1479_v59  ;;  %v1714_v39 = vsel %vm1135_vm3, %v1712_v53, %v1713_v28  ;;  %v2056_v43 = vrot.slane %v2054_v3, 4  ;;  %v1634_v24 = vadd.f32 %v1592_v20, %v1512_v56 }
 0x16a   : > { %v1716_v2 = vsel %vm1135_vm3, %v1713_v28, %v1715_v57  ;;  %v2059_v7 = vrot.slane %v2057_v41, 5  ;;  %v2065_v26 = vrot.slane %v2063_v32, 5  ;;  %v2069_v9 = vrot.slane %v2067_v55, 4 }
 0x16b   : > { %v1635_v48 = vadd.f32 %v1594_v8, %v1513_v29  ;;  %v2073_v1 = vshll.u32 %v2526_v11, 16  ;;  %v940_v16 = vmul.f32 %v3718_v58, %v4142_v37  ;;  %v1756_v60 = vadd.f32 %v1714_v39, %v1634_v24  ;;  %v4152_v24 = vld [vmem:[#allocation8_spill] sm:$0xff] }
 0x16c   : > { %v2060_v34 = vor.u32 %v2059_v7, %v2056_v43  ;;  %v941_v27 = vmul.f32 %v3718_v58, %v4143_v42  ;;  %v2070_v54 = vor.u32 %v2069_v9, %v2065_v26  ;;  %v979_v15 = vmul.f32 %v3582_v13, %v4142_v37 }
 0x16d   : > { %v1757_v40 = vadd.f32 %v1716_v2, %v1635_v48  ;;  %v2075_v25 = vrot.slane %v2073_v1, 5  ;;  %v980_v59 = vmul.f32 %v3582_v13, %v4143_v42  ;;  %v1776_v53 = vadd.f32 %v3817_v51, %v1756_v60 }
 0x16e   : > { %v2061_v20 = vrot.slane %v2060_v34, 4  ;;  %v1102_v8 = vmul.f32 %v3610_v21, %v4142_v37  ;;  %v2071_v28 = vrot.slane %v2070_v54, 4  ;;  %v1038_v3 = vrot.slane %v979_v15, 1  ;;  %v4154_v15 = vld [vmem:[#allocation11_spill] sm:$0xff] }
 0x16f   : > { %v1777_v17 = vadd.f32 %v3817_v51, %v1757_v40  ;;  %v1039_v56 = vrot.slane %v980_v59, 1  ;;  %v1103_v29 = vmul.f32 %v3610_v21, %v4143_v42  ;;  %v1792_v57 = vmax.f32 %v1776_v53, 0.0 }
 0x170   : > { %v2066_v41 = vsel %vm3133_vm6, %v2061_v20, %v2065_v26  ;;  %v1161_v39 = vrot.slane %v1102_v8, 2  ;;  %v2076_v43 = vsel %vm3133_vm6, %v2071_v28, %v2075_v25  ;;  %v4153_v37 = vrot.slane %v4152_v24, 1  ;;  %v4156_v20 = vld [vmem:[#allocation21_spill] sm:$0xff] }
 0x171   : > { %v1793_v11 = vmax.f32 %v1777_v17, 0.0  ;;  %v2140_v32 = vunpack.c.l.b16 %v2066_v41  ;;  %v1040_v55 = vsel %vm1012_vm2, %v1038_v3, %v1039_v56  ;;  %v2141_v7 = vunpack.c.l.b16 %v2076_v43 }
 0x172   : > { %v1042_v48 = vsel %vm1012_vm2, %v1039_v56, %v4153_v37  ;;  %v1079_v9 = vadd.f32 %v1040_v55, %v940_v16  ;;  %v1162_v1 = vrot.slane %v1103_v29, 2  ;;  %v1220_v60 = vmul.f32 %v3651_v0, %v4145_v30  ;;  %v4158_v37 = vld [vmem:[#allocation19_spill] sm:$0xff] }
 0x173   : > { %v1804_v2 = vpack.c.bf16 %v1793_v11, %v1792_v57  ;;  %v1080_v42 = vadd.f32 %v1042_v48, %v941_v27  ;;  %v1221_v26 = vmul.f32 %v3651_v0, %v4146_v5  ;;  %v1259_v40 = vmul.f32 %v3661_v36, %v4145_v30  ;;  %v4157_v11 = vld [vmem:[#allocation22_spill] sm:$0xff] }
 0x174   : > { %v2151_v34 = vpack.c.b16 %v2141_v7, %v2140_v32  ;;  %v1260_v54 = vmul.f32 %v3661_v36, %v4146_v5  ;;  %v1381_v16 = vmul.f32 %v3675_v45, %v4145_v30  ;;  %v1382_v27 = vmul.f32 %v3675_v45, %v4146_v5  ;;  %v2527_v7 = vld [vmem:[%s2920_s22 + $0x70] sm:$0xf] }
 0x175   : > { %2503 = vmatmul.msk.bf16.gmra.mxu1 %vm1828_vm7, %v1804_v2  ;;  %v1163_v25 = vsel %vm1135_vm3, %v1161_v39, %v1162_v1  ;;  %v4155_v59 = vrot.slane %v4154_v15, 2  ;;  %v1317_v17 = vrot.slane %v1259_v40, 1  ;;  %v1498_v8 = vmul.f32 %v3762_v49, %v4156_v20 }
 0x176   : > { %2538 = vmatmul.msk.bf16.gmra.mxu2 %vm522_vm1, %v2151_v34  ;;  %v1202_v28 = vadd.f32 %v1163_v25, %v1079_v9  ;;  %v1318_v56 = vrot.slane %v1260_v54, 1  ;;  %v1439_v29 = vrot.slane %v1381_v16, 2  ;;  %v1440_v57 = vrot.slane %v1382_v27, 2  ;;  %v4162_v34 = vld [vmem:[#allocation23_spill] sm:$0xff] }
 0x177   : > { %v1165_v53 = vsel %vm1135_vm3, %v1162_v1, %v4155_v59  ;;  %v1499_v41 = vmul.f32 %v3762_v49, %v4157_v11  ;;  %v1537_v39 = vmul.f32 %v3772_v19, %v4156_v20  ;;  %v1538_v43 = vmul.f32 %v3772_v19, %v4157_v11 }
 0x178   : > { %v1203_v3 = vadd.f32 %v1165_v53, %v1080_v42  ;;  %v1236_v32 = vadd.f32 %v1220_v60, %v1202_v28  ;;  %v1319_v24 = vsel %vm1012_vm2, %v1317_v17, %v1318_v56  ;;  %v4159_v48 = vrot.slane %v4158_v37, 1  ;;  %v4160_v42 = vld [vmem:[#allocation20_spill] sm:$0xff]  ;;  %v2528_v17 = vld [vmem:[%s2920_s22 + $0x74] sm:$0xf]  ;;  %v3883_v37 = vld [vmem:[%s4077_s9] ss:$0 sm:$0xff] }
 0x179   : > { %v1441_v9 = vsel %vm1135_vm3, %v1439_v29, %v1440_v57  ;;  %v4161_v1 = vrot.slane %v4160_v42, 2  ;;  %v1539_v54 = vmul.f32 %v3772_v19, %v4162_v34  ;;  %v1595_v60 = vrot.slane %v1537_v39, 1  ;;  %v2529_v39 = vld [vmem:[%s2920_s22 + $0x78] sm:$0x1] }
 0x17a   : > { %v1237_v55 = vadd.f32 %v1221_v26, %v1203_v3  ;;  %v1321_v2 = vsel %vm1012_vm2, %v1318_v56, %v4159_v48  ;;  %v1358_v16 = vadd.f32 %v1319_v24, %v1236_v32  ;;  %v1596_v27 = vrot.slane %v1538_v43, 1 }
 0x17b   : > { %v1443_v40 = vsel %vm1135_vm3, %v1440_v57, %v4161_v1  ;;  %v1659_v25 = vmul.f32 %v3787_v18, %v4156_v20  ;;  %v1598_v15 = vrot.slane %v1539_v54, 1  ;;  %v1660_v59 = vmul.f32 %v3787_v18, %v4157_v11 }
 0x17c   : > { %v1359_v26 = vadd.f32 %v1321_v2, %v1237_v55  ;;  %v1661_v53 = vmul.f32 %v3787_v18, %v4162_v34  ;;  %v2078_v28 = vshrl.u32 %v2527_v7, 16  ;;  %v1480_v3 = vadd.f32 %v1441_v9, %v1358_v16  ;;  %v2190_v9 = vpop.f32.mrf.mxu2 }
 0x17d   : > { %v1597_v29 = vsel %vm1012_vm2, %v1595_v60, %v1596_v27  ;;  %v1717_v57 = vrot.slane %v1659_v25, 2  ;;  %v1599_v43 = vsel %vm1012_vm2, %v1596_v27, %v1598_v15  ;;  %v1718_v32 = vrot.slane %v1660_v59, 2 }
 0x17e   : > { %v1481_v56 = vadd.f32 %v1443_v40, %v1359_v26  ;;  %v1720_v55 = vrot.slane %v1661_v53, 2  ;;  %v2080_v24 = vrot.slane %v2078_v28, 4  ;;  %v1514_v48 = vadd.f32 %v1498_v8, %v1480_v3 }
 0x17f   : > { %v2081_v42 = vshll.u32 %v2527_v7, 16  ;;  %v2087_v1 = vshll.u32 %v2528_v17, 16  ;;  %v1719_v40 = vsel %vm1135_vm3, %v1717_v57, %v1718_v32  ;;  %v2091_v60 = vshrl.u32 %v2528_v17, 16 }
 0x180   : > { %v1515_v2 = vadd.f32 %v1499_v41, %v1481_v56  ;;  %v1721_v54 = vsel %vm1135_vm3, %v1718_v32, %v1720_v55  ;;  %v2097_v16 = vshll.u32 %v2529_v39, 16  ;;  %v1636_v26 = vadd.f32 %v1597_v29, %v1514_v48 }
 0x181   : > { %v2083_v25 = vrot.slane %v2081_v42, 5  ;;  %v2089_v15 = vrot.slane %v2087_v1, 5  ;;  %v2093_v59 = vrot.slane %v2091_v60, 4  ;;  %v2191_v28 = vadd.f32 %v3883_v37, %v2190_v9  ;;  %v3909_v60 = vld [vmem:[%s4075_s7] ss:$0 sm:$0xff] }
 0x182   : > { %v1637_v27 = vadd.f32 %v1599_v43, %v1515_v2  ;;  %v2099_v53 = vrot.slane %v2097_v16, 5  ;;  %v942_v8 = vmul.f32 %v3718_v58, %v4145_v30  ;;  %v1758_v41 = vadd.f32 %v1719_v40, %v1636_v26 }
 0x183   : > { %v2084_v3 = vor.u32 %v2083_v25, %v2080_v24  ;;  %v943_v56 = vmul.f32 %v3718_v58, %v4146_v5  ;;  %v2094_v57 = vor.u32 %v2093_v59, %v2089_v15  ;;  %v982_v17 = vmul.f32 %v3582_v13, %v4145_v30 }
 0x184   : > { %v1759_v7 = vadd.f32 %v1721_v54, %v1637_v27  ;;  %v983_v29 = vmul.f32 %v3582_v13, %v4146_v5  ;;  %v1105_v39 = vmul.f32 %v3610_v21, %v4145_v30  ;;  %v1778_v43 = vadd.f32 %v3817_v51, %v1758_v41 }
 0x185   : > { %v2085_v55 = vrot.slane %v2084_v3, 4  ;;  %v1106_v24 = vmul.f32 %v3610_v21, %v4146_v5  ;;  %v2095_v48 = vrot.slane %v2094_v57, 4  ;;  %v1043_v58 = vrot.slane %v982_v17, 1  ;;  %v4163_v5 = vld [vmem:[#allocation17_spill] sm:$0xff] }
 0x186   : > { %v1779_v32 = vadd.f32 %v3817_v51, %v1759_v7  ;;  %v1044_v2 = vrot.slane %v983_v29, 1  ;;  %v1166_v42 = vrot.slane %v1105_v39, 2  ;;  %v1794_v1 = vmax.f32 %v1778_v43, 0.0  ;;  %v4165_v7 = vld [vmem:[#allocation18_spill] sm:$0xff] }
 0x187   : > { %v2090_v13 = vsel %vm3133_vm6, %v2085_v55, %v2089_v15  ;;  %v1167_v40 = vrot.slane %v1106_v24, 2  ;;  %v2100_v30 = vsel %vm3133_vm6, %v2095_v48, %v2099_v53  ;;  %v4164_v16 = vrot.slane %v4163_v5, 1 }
 0x188   : > { %v1795_v9 = vmax.f32 %v1779_v32, 0.0  ;;  %v2142_v54 = vunpack.c.l.b16 %v2090_v13  ;;  %v1045_v21 = vsel %vm1012_vm2, %v1043_v58, %v1044_v2  ;;  %v2143_v25 = vunpack.c.l.b16 %v2100_v30 }
 0x189   : > { %v1047_v26 = vsel %vm1012_vm2, %v1044_v2, %v4164_v16  ;;  %v1081_v59 = vadd.f32 %v1045_v21, %v942_v8  ;;  %v1168_v41 = vsel %vm1135_vm3, %v1166_v42, %v1167_v40  ;;  %v4166_v53 = vrot.slane %v4165_v7, 2  ;;  %v1862_v39 = vpop.f32.mrf.mxu1  ;;  %v2531_v16 = vld [vmem:[%s2920_s22 + $0x84] sm:$0xf] }
 0x18a   : > { %v1805_v27 = vpack.c.bf16 %v1795_v9, %v1794_v1  ;;  %v1082_v15 = vadd.f32 %v1047_v26, %v943_v56  ;;  %v1222_v57 = vmul.f32 %v3651_v0, %v4156_v20  ;;  %v1223_v17 = vmul.f32 %v3651_v0, %v4157_v11 }
 0x18b   : > { %v1170_v3 = vsel %vm1135_vm3, %v1167_v40, %v4166_v53  ;;  %v2152_v29 = vpack.c.b16 %v2143_v25, %v2142_v54  ;;  %v1204_v43 = vadd.f32 %v1168_v41, %v1081_v59  ;;  %v1262_v8 = vmul.f32 %v3661_v36, %v4156_v20  ;;  %v2530_v54 = vld [vmem:[%s2920_s22 + $0x80] sm:$0xf] }
 0x18c   : > { %2504 = vmatmul.msk.bf16.gmra.mxu1 %vm1828_vm7, %v1805_v27  ;;  %v1205_v32 = vadd.f32 %v1170_v3, %v1082_v15  ;;  %v1863_v56 = vadd.f32 %v3909_v60, %v1862_v39  ;;  %v1263_v55 = vmul.f32 %v3661_v36, %v4157_v11  ;;  %v1384_v24 = vmul.f32 %v3675_v45, %v4156_v20 }
 0x18d   : > { %v1385_v0 = vmul.f32 %v3675_v45, %v4157_v11  ;;  %2539 = vmatmul.msk.bf16.gmra.mxu2 %vm522_vm1, %v2152_v29  ;;  %v1238_v48 = vadd.f32 %v1222_v57, %v1204_v43  ;;  %v1322_v2 = vrot.slane %v1262_v8, 1  ;;  %v1386_v42 = vmul.f32 %v3675_v45, %v4162_v34 }
 0x18e   : > { %v1239_v58 = vadd.f32 %v1223_v17, %v1205_v32  ;;  %v2230_v1 = vadd.f32 %v2191_v28, %v1863_v56  ;;  %v1323_v9 = vrot.slane %v1263_v55, 1  ;;  %v1444_v13 = vrot.slane %v1384_v24, 2  ;;  %v2532_v32 = vld [vmem:[%s2920_s22 + $0x88] sm:$0x1]  ;;  %s364_s22 = sand.u32 1, %s2746_s14  }
 0x18f   : > { %v1445_v36 = vrot.slane %v1385_v0, 2  ;;  %v1447_v40 = vrot.slane %v1386_v42, 2  ;;  %v1500_v20 = vmul.f32 %v3762_v49, %v3390_v62  ;;  %v1501_v11 = vmul.f32 %v3762_v49, %v3434_v44  ;;  %s2385_s23 = sshll.u32 %s364_s22, 4  ;;  %s2281_s1 = scalar_lea.sflag [#allocation3], %s364_s22 }
 0x190   : > { %v1540_v30 = vmul.f32 %v3772_v19, %v3390_v62  ;;  %v1324_v21 = vsel %vm1012_vm2, %v1322_v2, %v1323_v9  ;;  %v4167_v5 = vrot.slane %v3344_v50, 1  ;;  %v1541_v28 = vmul.f32 %v3772_v19, %v3434_v44  ;;  %2246 = vxpose.xlu0.b32.start [1/16] (narrow) %v2230_v1, 16  ;;  %s366_s28 = scalar_lea.vmem [#allocation2], %s2385_s23  ;;  %s2696_s23 = scalar_lea.hbm %s4078_s10, 64 }
 0x191   : > { %v1446_v34 = vsel %vm1135_vm3, %v1444_v13, %v1445_v36  ;;  %v1360_v26 = vadd.f32 %v1324_v21, %v1238_v48  ;;  %v1448_v27 = vsel %vm1135_vm3, %v1445_v36, %v1447_v40  ;;  %v1662_v15 = vmul.f32 %v3787_v18, %v3390_v62  ;;  %v1864_v24 = vpop.f32.mrf.mxu1  ;;  %s2294_s21 = sshll.u32 %s366_s28, 4  ;;  %p2698_p4 = scmp.lt.s32.totalorder %s2696_s23, %s2692_s17  ;;  %s2295_s21 = int_to_ptr.vmem [resolvable:$true] %s2294_s21 }
 0x192   : > { %v1326_v45 = vsel %vm1012_vm2, %v1323_v9, %v4167_v5  ;;  %v1600_v25 = vrot.slane %v1540_v30, 1  ;;  %v1601_v59 = vrot.slane %v1541_v28, 1  ;;  %v1663_v50 = vmul.f32 %v3787_v18, %v3434_v44  ;;  %v2192_v44 = vpop.f32.mrf.mxu2 }
 0x193   : > { %v1361_v49 = vadd.f32 %v1326_v45, %v1239_v58  ;;  %v2102_v41 = vshrl.u32 %v2530_v54, 16  ;;  %v1482_v7 = vadd.f32 %v1446_v34, %v1360_v26  ;;  %v2105_v3 = vshll.u32 %v2530_v54, 16  ;;  %p2699_p5 = por %p2698_p4, %p2697_p2 }
 0x194   : > { %v2111_v19 = vshll.u32 %v2531_v16, 16  ;;  %v1602_v57 = vsel %vm1012_vm2, %v1600_v25, %v1601_v59  ;;  %v4168_v17 = vrot.slane %v3493_v10, 1  ;;  %v1722_v39 = vrot.slane %v1662_v15, 2 }
 0x195   : > { %v1483_v53 = vadd.f32 %v1448_v27, %v1361_v49  ;;  %v1723_v43 = vrot.slane %v1663_v50, 2  ;;  %v1516_v8 = vadd.f32 %v1500_v20, %v1482_v7  ;;  %v2104_v62 = vrot.slane %v2102_v41, 4  ;;  %p2700_p6 = pnand %p2699_p5, %p2695_p1 }
 0x196   : > { %v1604_v29 = vsel %vm1012_vm2, %v1601_v59, %v4168_v17  ;;  %v2107_v55 = vrot.slane %v2105_v3, 5  ;;  %v4169_v0 = vrot.slane %v3496_v33, 2  ;;  %v2113_v58 = vrot.slane %v2111_v19, 5 }
 0x197   : > { %v1517_v56 = vadd.f32 %v1501_v11, %v1483_v53  ;;  %v1724_v18 = vsel %vm1135_vm3, %v1722_v39, %v1723_v43  ;;  %v2115_v2 = vshrl.u32 %v2531_v16, 16  ;;  %v1638_v10 = vadd.f32 %v1602_v57, %v1516_v8 }
 0x198   : > { %v1726_v48 = vsel %vm1135_vm3, %v1723_v43, %v4169_v0  ;;  %v2108_v1 = vor.u32 %v2107_v55, %v2104_v62  ;;  %v2121_v9 = vshll.u32 %v2532_v32, 16  ;;  %v1865_v36 = vadd.f32 %v3909_v60, %v1864_v24 }
 0x199   : > { %v1639_v42 = vadd.f32 %v1604_v29, %v1517_v56  ;;  %v2117_v13 = vrot.slane %v2115_v2, 4  ;;  %v2193_v40 = vadd.f32 %v3883_v37, %v2192_v44  ;;  %v1607_v20 = vsel %vm1012_vm2, %v1605_v14, %v1606_v52 }
 0x19a   : > { %v1760_v33 = vadd.f32 %v1724_v18, %v1638_v10  ;;  %v2109_v30 = vrot.slane %v2108_v1, 4  ;;  %v2123_v54 = vrot.slane %v2121_v9, 5  ;;  %v1640_v45 = vadd.f32 %v1607_v20, %v3562_v22 }
 0x19b   : > { %v1761_v11 = vadd.f32 %v1726_v48, %v1639_v42  ;;  %v2118_v21 = vor.u32 %v2117_v13, %v2113_v58  ;;  %v2231_v5 = vadd.f32 %v2193_v40, %v1865_v36  ;;  %v1641_v34 = vadd.f32 %v3668_v63, %v3599_v31 }
 0x19c   : > { %v1780_v28 = vadd.f32 %v3817_v51, %v1760_v33  ;;  %v2114_v46 = vsel %vm3133_vm6, %v2109_v30, %v2113_v58  ;;  %v1729_v14 = vsel %vm1135_vm3, %v1727_v61, %v1728_v23  ;;  %v1731_v22 = vsel %vm1135_vm3, %v1728_v23, %v1730_v12  ;;  %v2195_v12 = vpop.f32.mrf.mxu2 }
 0x19d   : > { %v1781_v16 = vadd.f32 %v3817_v51, %v1761_v11  ;;  %v2119_v6 = vrot.slane %v2118_v21, 4  ;;  %2247 = vxpose.xlu0.b32.cont [2/16] (narrow) %v2231_v5, 16  ;;  %v1762_v31 = vadd.f32 %v1729_v14, %v1640_v45  ;;  %v2144_v26 = vunpack.c.l.b16 %v2114_v46 }
 0x19e   : > { %v1796_v52 = vmax.f32 %v1780_v28, 0.0  ;;  %v1763_v49 = vadd.f32 %v1731_v22, %v1641_v34  ;;  %v2196_v50 = vadd.f32 %v3883_v37, %v2195_v12 }
 0x19f   : > { %v1797_v63 = vmax.f32 %v1781_v16, 0.0  ;;  %v2124_v27 = vsel %vm3133_vm6, %v2119_v6, %v2123_v54  ;;  %v1782_v35 = vadd.f32 %v3817_v51, %v1762_v31 }
 0x1a0   : > { %v2145_v61 = vunpack.c.l.b16 %v2124_v27  ;;  %v1783_v59 = vadd.f32 %v3817_v51, %v1763_v49 }
 0x1a1   : > { %v1806_v25 = vpack.c.bf16 %v1797_v63, %v1796_v52  ;;  %v1798_v4 = vmax.f32 %v1782_v35, 0.0 }
 0x1a2   : > { %v2153_v38 = vpack.c.b16 %v2145_v61, %v2144_v26  ;;  %v1799_v15 = vmax.f32 %v1783_v59, 0.0 }
 0x1a3   : > { %2505 = vmatmul.msk.bf16.gmra.mxu1 %vm1828_vm7, %v1806_v25 }
 0x1a4   : > { %2540 = vmatmul.msk.bf16.gmra.mxu2 %vm522_vm1, %v2153_v38  ;;  %v1807_v23 = vpack.c.bf16 %v1799_v15, %v1798_v4  ;;  %v2197_v53 = vpop.f32.mrf.mxu2 }
 0x1a5   : > { %v2198_v51 = vadd.f32 %v3883_v37, %v2197_v53 }
 0x1aa   : > { %v1867_v41 = vpop.f32.mrf.mxu1 }
 0x1ab   : > { %v1868_v47 = vadd.f32 %v3909_v60, %v1867_v41 }
 0x1ad   : > { %v2232_v7 = vadd.f32 %v2196_v50, %v1868_v47 }
 0x1af   : > { %2248 = vxpose.xlu0.b32.cont [3/16] (narrow) %v2232_v7, 16 }
 0x1b2   : > { %v1869_v3 = vpop.f32.mrf.mxu1 }
 0x1b3   : > { %2506 = vmatmul.msk.bf16.gmra.mxu1 %vm1828_vm7, %v1807_v23  ;;  %v1870_v19 = vadd.f32 %v3909_v60, %v1869_v3 }
 0x1b5   : > { %v2233_v57 = vadd.f32 %v2198_v51, %v1870_v19 }
 0x1b6   : > { %v2200_v17 = vpop.f32.mrf.mxu2 }
 0x1b7   : > { %2249 = vxpose.xlu0.b32.cont [4/16] (narrow) %v2233_v57, 16  ;;  %v2201_v29 = vadd.f32 %v3883_v37, %v2200_v17 }
 0x1be   : > { %v2202_v8 = vpop.f32.mrf.mxu2 }
 0x1bf   : > { %v2203_v62 = vadd.f32 %v3883_v37, %v2202_v8 }
 0x1c7   : > { %v2205_v44 = vpop.f32.mrf.mxu2 }
 0x1c8   : > { %v2206_v18 = vadd.f32 %v3883_v37, %v2205_v44 }
 0x1c9   : > { %v1872_v39 = vpop.f32.mrf.mxu1 }
 0x1ca   : > { %v1873_v43 = vadd.f32 %v3909_v60, %v1872_v39 }
 0x1cc   : > { %v2234_v32 = vadd.f32 %v2201_v29, %v1873_v43 }
 0x1ce   : > { %2250 = vxpose.xlu0.b32.cont [5/16] (narrow) %v2234_v32, 16 }
 0x1cf   : > { %v2207_v2 = vpop.f32.mrf.mxu2 }
 0x1d0   : > { %v2208_v42 = vadd.f32 %v3883_v37, %v2207_v2 }
 0x1d1   : > { %v1874_v56 = vpop.f32.mrf.mxu1 }
 0x1d2   : > { %v1875_v55 = vadd.f32 %v3909_v60, %v1874_v56 }
 0x1d4   : > { %v2235_v24 = vadd.f32 %v2203_v62, %v1875_v55 }
 0x1d6   : > { %2251 = vxpose.xlu0.b32.cont [6/16] (narrow) %v2235_v24, 16 }
 0x1dc   : > { %v1877_v0 = vpop.f32.mrf.mxu1 }
 0x1dd   : > { %v1878_v48 = vadd.f32 %v3909_v60, %v1877_v0 }
 0x1df   : > { %v2236_v58 = vadd.f32 %v2206_v18, %v1878_v48 }
 0x1e1   : > { %2252 = vxpose.xlu0.b32.cont [7/16] (narrow) %v2236_v58, 16 }
 0x1e3   : > { %v2210_v13 = vpop.f32.mrf.mxu2 }
 0x1e4   : > { %v1879_v10 = vpop.f32.mrf.mxu1  ;;  %v2211_v36 = vadd.f32 %v3883_v37, %v2210_v13 }
 0x1e5   : > { %v1880_v1 = vadd.f32 %v3909_v60, %v1879_v10 }
 0x1e7   : > { %v2237_v9 = vadd.f32 %v2208_v42, %v1880_v1 }
 0x1e9   : > { %2253 = vxpose.xlu0.b32.cont [8/16] (narrow) %v2237_v9, 16 }
 0x1eb   : > { %v2212_v11 = vpop.f32.mrf.mxu2 }
 0x1ec   : > { %v2213_v54 = vadd.f32 %v3883_v37, %v2212_v11 }
 0x1f2   : > { %v1882_v40 = vpop.f32.mrf.mxu1 }
 0x1f3   : > { %v1883_v20 = vadd.f32 %v3909_v60, %v1882_v40 }
 0x1f5   : > { %v2238_v33 = vadd.f32 %v2211_v36, %v1883_v20 }
 0x1f7   : > { %2254 = vxpose.xlu0.b32.cont [9/16] (narrow) %v2238_v33, 16 }
 0x1f9   : > { %v2215_v45 = vpop.f32.mrf.mxu2 }
 0x1fa   : > { %v1884_v30 = vpop.f32.mrf.mxu1  ;;  %v2216_v34 = vadd.f32 %v3883_v37, %v2215_v45 }
 0x1fb   : > { %v1885_v21 = vadd.f32 %v3909_v60, %v1884_v30 }
 0x1fd   : > { %v2239_v5 = vadd.f32 %v2213_v54, %v1885_v21 }
 0x1ff   : > { %2255 = vxpose.xlu0.b32.cont [10/16] (narrow) %v2239_v5, 16 }
 0x201   : > { %v2217_v14 = vpop.f32.mrf.mxu2 }
 0x202   : > { %v2218_v22 = vadd.f32 %v3883_v37, %v2217_v14 }
 0x209   : > { %v1887_v28 = vpop.f32.mrf.mxu1 }
 0x20a   : > { %v1888_v16 = vadd.f32 %v3909_v60, %v1887_v28 }
 0x20c   : > { %v2240_v46 = vadd.f32 %v2216_v34, %v1888_v16 }
 0x20e   : > { %2256 = vxpose.xlu0.b32.cont [11/16] (narrow) %v2240_v46, 16 }
 0x210   : > { %v2220_v63 = vpop.f32.mrf.mxu2 }
 0x211   : > { %v1889_v6 = vpop.f32.mrf.mxu1  ;;  %v2221_v26 = vadd.f32 %v3883_v37, %v2220_v63 }
 0x212   : > { %v1890_v31 = vadd.f32 %v3909_v60, %v1889_v6 }
 0x214   : > { %v2241_v52 = vadd.f32 %v2218_v22, %v1890_v31 }
 0x216   : > { %2257 = vxpose.xlu0.b32.cont [12/16] (narrow) %v2241_v52, 16 }
 0x218   : > { %v2222_v35 = vpop.f32.mrf.mxu2 }
 0x219   : > { %v2223_v59 = vadd.f32 %v3883_v37, %v2222_v35 }
 0x220   : > { %v1892_v49 = vpop.f32.mrf.mxu1 }
 0x221   : > { %v1893_v27 = vadd.f32 %v3909_v60, %v1892_v49 }
 0x223   : > { %v2242_v25 = vadd.f32 %v2221_v26, %v1893_v27 }
 0x225   : > { %2258 = vxpose.xlu0.b32.cont [13/16] (narrow) %v2242_v25, 16 }
 0x227   : > { %v2225_v15 = vpop.f32.mrf.mxu2 }
 0x228   : > { %v1894_v61 = vpop.f32.mrf.mxu1  ;;  %v2226_v23 = vadd.f32 %v3883_v37, %v2225_v15 }
 0x229   : > { %v1895_v38 = vadd.f32 %v3909_v60, %v1894_v61 }
 0x22b   : > { %v2243_v4 = vadd.f32 %v2223_v59, %v1895_v38 }
 0x22d   : > { %2259 = vxpose.xlu0.b32.cont [14/16] (narrow) %v2243_v4, 16 }
 0x22f   : > { %v2227_v47 = vpop.f32.mrf.mxu2 }
 0x230   : > { %v1897_v12 = vpop.f32.mrf.mxu1  ;;  %v2228_v53 = vadd.f32 %v3883_v37, %v2227_v47 }
 0x231   : > { %v1898_v50 = vadd.f32 %v3909_v60, %v1897_v12 }
 0x233   : > { %v2244_v41 = vadd.f32 %v2226_v23, %v1898_v50 }
 0x235   : > { %2260 = vxpose.xlu0.b32.cont [15/16] (narrow) %v2244_v41, 16 }
 0x238   : > { %v1899_v7 = vpop.f32.mrf.mxu1 }
 0x239   : > { %v1900_v51 = vadd.f32 %v3909_v60, %v1899_v7 }
 0x23b   : > { %v2245_v3 = vadd.f32 %v2228_v53, %v1900_v51 }
 0x23d   : > { %2261 = vxpose.xlu0.b32.end [16/16] (narrow) %v2245_v3, 16 }
 0x269   : > { %v2262_v19 = vpop.trf.xlu0 }
 0x26a   : > { %2278 = vst [vmem:[%s366_s28] sm:$0xff] %v2262_v19 }
 0x271   : > { %v2263_v37 = vpop.trf.xlu0 }
 0x272   : > { %2279 = vst [vmem:[%s366_s28 + $0x8] sm:$0xff] %v2263_v37 }
 0x273   : > { %2703 = shalt.err (!%p2700_p6)
}
 0x274   : > { %s2773_s22 = smov 128   ;;  %s2774_s28 = smov 256  }
 0x275   : > { %s2775_s29 = smov 8  }
 0x276   : > { %2574 = dma.vmem_to_hbm [thread:$0]  (%p2882_p3), %s2295_s21, 256, %s2297_s0, %s2281_s1, %s2773_s22, %s2774_s28, %s2775_s29  }
 0x277 PF: > { %p2580_p7 = scmp.ge.s32.totalorder %s2770_s20, 2  ;;  %s2311_s30 = sand.u32 1, %s2742_s13  }
 0x278   : > { %s2312_s3 = scalar_lea.sflag [#allocation3], %s2311_s30 }
 0x279   : > { %p2577_p9 = pnand %p2580_p7, %p2891_p8 }
 0x27b   : > { %p2578_p10 = pneg %p2577_p9 }
 0x27d   : > { %2737 = dma.done.wait (%p2578_p10), %s2312_s3, 256  }
 0x27e   : > { %2739 = vsyncadd (%p2578_p10), %s2312_s3, 4294967040  ;;  %s23_s20 = sadd.s32 1, %s2770_s20   ;;  %s4170_s0 = sld [smem:[#allocation5_spill]] }
 0x27f   : > { %p20_p11 = scmp.ge.s32.totalorder %s23_s20, 6   ;;  %s4171_s1 = sld [smem:[#allocation6_spill]] }
 0x280   : > { %s4172_s13 = smov %s2746_s14  ;;  %s4173_s14 = smov %s2750_s15 }
 0x281   : > { %s4174_s15 = smov %s2900_s11  ;;  %s4175_s16 = smov %s2762_s18 }
 0x282   : > { %s4176_s17 = smov %s2766_s19  ;;  %22 = sbr.rel (!%p20_p11) target bundleno = 10 (0xa), region = 98 }
 0x284   : > { %s4177_s18 = smov %s4170_s0 }
 0x285   : > { %s4178_s19 = smov %s4171_s1 }
 0x287   :  { %2318 = vsyncpa [#allocation3], 1 }
 0x288   :  { %2320 = vsyncpa [#allocation3 + $0x1], 1 }

</bundles_post_ra>
